<compile_context>
chip_gen: v7x
topology: tpu7x:2x2x1
jax: 0.10.0
libtpu: 0.0.40
codegen_flags: <defaults>
</compile_context>

<pallas_src>
import math

import jax
import jax.numpy as jnp
from jax.experimental import pallas as pl
from jax.experimental.pallas import tpu as pltpu

# ---- module-consistent small shapes ----------------------------------------
B = 2          # batch
S_TGT = 8      # decoder (target) sequence length
S_SRC = 8      # encoder (source) sequence length
D_MODEL = 32   # model dim
N_HEADS = 4
D_K = D_MODEL // N_HEADS
D_FF = 64
EPS = 1e-6
SQRT_DK = math.sqrt(D_K)

# Packed attention slab: (D_MODEL + 1, 8 * D_MODEL) f32.
# Column layout (lane axis), in units of D_MODEL:
#   [0,3D)  : fused W_q|W_k|W_v of the self-attention block
#   [3D,4D) : W_o of the self-attention block
#   [4D,5D) : W_q of the cross-attention block
#   [5D,7D) : fused W_k|W_v of the cross-attention block
#   [7D,8D) : W_o of the cross-attention block
# Rows [0,D) are weights; row D holds the matching biases (same column layout).
ATTN_ROWS = D_MODEL + 1

# Packed FFN slab: (FFN_ROWS, D_FF) f32.
#   rows [0,32)    : W1 (D_MODEL, D_FF)
#   row  32        : b1 (1, D_FF)
#   rows [40,104)  : W2 (D_FF, D_MODEL), cols [D_MODEL, D_FF) zero-padded
#   row  104       : b2 (1, D_MODEL),    cols [D_MODEL, D_FF) zero-padded
FFN_ROW_W2 = 40
FFN_ROW_B2 = FFN_ROW_W2 + D_FF
FFN_ROWS = FFN_ROW_B2 + 1


# ---- in-kernel helpers (traced into the kernel body) ------------------------
def _layer_norm(x, alpha, bias):
    # torch: alpha * (x - mean) / (std + eps) + bias, std is unbiased (N-1).
    mean = jnp.mean(x, axis=-1, keepdims=True)
    var = jnp.sum((x - mean) ** 2, axis=-1, keepdims=True) * (1.0 / (D_MODEL - 1))
    std = jnp.sqrt(var)
    return alpha * (x - mean) / (std + EPS) + bias


def _attention(q, k, v, wo, bo, s_q, s_kv):
    """q: (B*s_q, D); k, v: (B*s_kv, D); wo: (D, D); bo: (1, D)."""
    ctx_heads = []
    for h in range(N_HEADS):                     # static, fully unrolled
        lo = h * D_K
        qh = q[:, lo:lo + D_K].reshape(B, s_q, D_K)
        kh = k[:, lo:lo + D_K].reshape(B, s_kv, D_K)
        vh = v[:, lo:lo + D_K].reshape(B, s_kv, D_K)
        # scores = q @ k^T, batched over B in one dot_general
        scores = jnp.einsum('bqd,bkd->bqk', qh, kh,
                            preferred_element_type=jnp.float32)
        # torch reference: (q @ k^T) // sqrt(d_k)  -> exact divide, then floor
        scores = jnp.floor(scores / SQRT_DK)
        # NOTE: reference's masked_fill is non-in-place and discarded -> no mask.
        scores = scores - jnp.max(scores, axis=-1, keepdims=True)
        p = jnp.exp(scores)
        attn = p / jnp.sum(p, axis=-1, keepdims=True)   # exact softmax denom
        ctx = jnp.einsum('bqk,bkd->bqd', attn, vh,
                         preferred_element_type=jnp.float32)
        ctx_heads.append(ctx.reshape(B * s_q, D_K))
    # Heads occupy disjoint, in-order 8-lane ranges: contiguous lane concat,
    # then a SINGLE K=D_MODEL output-projection matmul.
    ctx_all = jnp.concatenate(ctx_heads, axis=-1)       # (B*s_q, D)
    return jnp.dot(ctx_all, wo, preferred_element_type=jnp.float32) + bo


# ---- the Pallas kernel: full decoder block, whole batch, one invocation -----
def decoder_block_kernel(x_ref, enc_ref, attn_ref, ffn_ref, ln_ref, o_ref):
    D = D_MODEL
    x = x_ref[...]            # (B*S_TGT, D)
    enc = enc_ref[...]        # (B*S_SRC, D)

    # unpack the two weight slabs (static slices)
    attn = attn_ref[...]                      # (D+1, 8D)
    w_all = attn[0:D, :]                      # (D, 8D)
    b_all = attn[D:D + 1, :]                  # (1, 8D)

    ffn = ffn_ref[...]                        # (FFN_ROWS, D_FF)
    w1 = ffn[0:D, :]                          # (D, D_FF)
    b1 = ffn[D:D + 1, :]                      # (1, D_FF)
    w2 = ffn[FFN_ROW_W2:FFN_ROW_W2 + D_FF, 0:D]        # (D_FF, D)
    b2 = ffn[FFN_ROW_B2:FFN_ROW_B2 + 1, 0:D]            # (1, D)

    # hoist the 6 SMEM layer-norm scalars once
    a0, c0 = ln_ref[0], ln_ref[1]
    a1, c1 = ln_ref[2], ln_ref[3]
    a2, c2 = ln_ref[4], ln_ref[5]

    # --- residual 1: x + self_attention(norm(x), norm(x), norm(x)) ----------
    xn = _layer_norm(x, a0, c0)
    qkv = jnp.dot(xn, w_all[:, 0:3 * D],
                  preferred_element_type=jnp.float32) + b_all[:, 0:3 * D]
    x = x + _attention(qkv[:, 0:D], qkv[:, D:2 * D], qkv[:, 2 * D:3 * D],
                       w_all[:, 3 * D:4 * D], b_all[:, 3 * D:4 * D],
                       S_TGT, S_TGT)

    # --- residual 2: x + cross_attention(norm(x), encoder_output) -----------
    xn = _layer_norm(x, a1, c1)
    q = jnp.dot(xn, w_all[:, 4 * D:5 * D],
                preferred_element_type=jnp.float32) + b_all[:, 4 * D:5 * D]
    kv = jnp.dot(enc, w_all[:, 5 * D:7 * D],
                 preferred_element_type=jnp.float32) + b_all[:, 5 * D:7 * D]
    x = x + _attention(q, kv[:, 0:D], kv[:, D:2 * D],
                       w_all[:, 7 * D:8 * D], b_all[:, 7 * D:8 * D],
                       S_TGT, S_SRC)

    # --- residual 3: x + linear2(relu(linear1(norm(x)))) ---------------------
    xn = _layer_norm(x, a2, c2)
    hdn = jnp.maximum(
        jnp.dot(xn, w1, preferred_element_type=jnp.float32) + b1, 0.0)
    x = x + jnp.dot(hdn, w2, preferred_element_type=jnp.float32) + b2

    o_ref[...] = x


# ---- one-time parameter packing (OUTSIDE the per-step hot path) -------------
def pack_decoder_params(w_self, b_self, w_cross, b_cross, w1, b1, w2, b2):
    """Pack all attention / FFN weights into two slabs. Call once at init."""
    w_attn = jnp.concatenate(
        [w_self[0], w_self[1], w_self[2], w_self[3],
         w_cross[0], w_cross[1], w_cross[2], w_cross[3]], axis=1)       # (D, 8D)
    b_attn = jnp.concatenate(
        [b_self.reshape(-1), b_cross.reshape(-1)])[None, :]             # (1, 8D)
    attn_slab = jnp.concatenate([w_attn, b_attn], axis=0).astype(jnp.float32)

    ffn_slab = jnp.zeros((FFN_ROWS, D_FF), jnp.float32)
    ffn_slab = ffn_slab.at[0:D_MODEL, :].set(w1)
    ffn_slab = ffn_slab.at[D_MODEL, :].set(b1.reshape(-1))
    ffn_slab = ffn_slab.at[FFN_ROW_W2:FFN_ROW_W2 + D_FF, 0:D_MODEL].set(w2)
    ffn_slab = ffn_slab.at[FFN_ROW_B2, 0:D_MODEL].set(b2.reshape(-1))
    return attn_slab, ffn_slab


# ---- wrapper -----------------------------------------------------------------
def decoder_block(x, enc_out, attn_slab, ffn_slab, ln,
                  src_mask=None, tgt_mask=None):
    # masks intentionally unused: reference's masked_fill result is discarded.
    del src_mask, tgt_mask

    x2 = x.reshape(B * S_TGT, D_MODEL)
    enc2 = enc_out.reshape(B * S_SRC, D_MODEL)

    vmem = pl.BlockSpec(memory_space=pltpu.MemorySpace.VMEM)
    smem = pl.BlockSpec(memory_space=pltpu.MemorySpace.SMEM)

    out2 = pl.pallas_call(
        decoder_block_kernel,
        out_shape=jax.ShapeDtypeStruct((B * S_TGT, D_MODEL), jnp.float32),
        in_specs=[vmem, vmem, vmem, vmem, smem],
        out_specs=vmem,
    )(x2, enc2, attn_slab, ffn_slab, ln)
    return out2.reshape(B, S_TGT, D_MODEL)


# ---- deterministic parameter init + run -------------------------------------
if __name__ == "__main__":
    key = jax.random.PRNGKey(0)
    keys = jax.random.split(key, 12)

    x = jax.random.normal(keys[0], (B, S_TGT, D_MODEL), jnp.float32)
    enc_out = jax.random.normal(keys[1], (B, S_SRC, D_MODEL), jnp.float32)

    scale = 0.1
    # self-attention parameters: stacked [wq, wk, wv, wo] as (d_in, d_out)
    w_self = jax.random.normal(keys[2], (4, D_MODEL, D_MODEL), jnp.float32) * scale
    b_self = jax.random.normal(keys[3], (4, D_MODEL), jnp.float32) * scale
    # cross-attention parameters
    w_cross = jax.random.normal(keys[4], (4, D_MODEL, D_MODEL), jnp.float32) * scale
    b_cross = jax.random.normal(keys[5], (4, D_MODEL), jnp.float32) * scale
    # feed-forward parameters
    w1 = jax.random.normal(keys[6], (D_MODEL, D_FF), jnp.float32) * scale
    b1 = jax.random.normal(keys[7], (1, D_FF), jnp.float32) * scale
    w2 = jax.random.normal(keys[8], (D_FF, D_MODEL), jnp.float32) * scale
    b2 = jax.random.normal(keys[9], (1, D_MODEL), jnp.float32) * scale
    # layer-norm scalars: [alpha0, bias0, alpha1, bias1, alpha2, bias2]
    ln = jnp.array([1.0, 0.0, 1.0, 0.0, 1.0, 0.0], jnp.float32)

    # pack weights ONCE (outside the hot path)
    attn_slab, ffn_slab = pack_decoder_params(
        w_self, b_self, w_cross, b_cross, w1, b1, w2, b2)
    attn_slab, ffn_slab = jax.block_until_ready((attn_slab, ffn_slab))

    out = decoder_block(x, enc_out, attn_slab, ffn_slab, ln)
    jax.block_until_ready(out)
    assert out.shape == (B, S_TGT, D_MODEL)
    assert bool(jnp.all(jnp.isfinite(out)))
    print("KERNEL_OK")
</pallas_src>

<mosaic_0001>
module attributes {stable_mosaic.version = 11 : i64} {
  func.func @decoder_block_kernel(%arg0: memref<16x32xf32, #tpu.memory_space<vmem>>, %arg1: memref<16x32xf32, #tpu.memory_space<vmem>>, %arg2: memref<33x256xf32, #tpu.memory_space<vmem>>, %arg3: memref<105x64xf32, #tpu.memory_space<vmem>>, %arg4: memref<6xf32, #tpu.memory_space<smem>>, %arg5: memref<16x32xf32, #tpu.memory_space<vmem>>) attributes {dimension_semantics = [], scalar_prefetch = 0 : i64, scratch_operands = 0 : i64, tpu.core_type = #tpu.core_type<tc>} {
    %c0 = arith.constant 0 : index
    %c0_0 = arith.constant 0 : index
    %0 = vector.load %arg0[%c0, %c0_0] : memref<16x32xf32, #tpu.memory_space<vmem>>, vector<16x32xf32>
    %c0_1 = arith.constant 0 : index
    %c0_2 = arith.constant 0 : index
    %1 = vector.load %arg1[%c0_1, %c0_2] : memref<16x32xf32, #tpu.memory_space<vmem>>, vector<16x32xf32>
    %c0_3 = arith.constant 0 : index
    %c0_4 = arith.constant 0 : index
    %2 = vector.load %arg2[%c0_3, %c0_4] : memref<33x256xf32, #tpu.memory_space<vmem>>, vector<33x256xf32>
    %3 = vector.extract_strided_slice %2 {offsets = [0, 0], sizes = [32, 256], strides = [1, 1]} : vector<33x256xf32> to vector<32x256xf32>
    %4 = vector.extract_strided_slice %2 {offsets = [32, 0], sizes = [1, 256], strides = [1, 1]} : vector<33x256xf32> to vector<1x256xf32>
    %c0_5 = arith.constant 0 : index
    %c0_6 = arith.constant 0 : index
    %5 = vector.load %arg3[%c0_5, %c0_6] : memref<105x64xf32, #tpu.memory_space<vmem>>, vector<105x64xf32>
    %6 = vector.extract_strided_slice %5 {offsets = [0, 0], sizes = [32, 64], strides = [1, 1]} : vector<105x64xf32> to vector<32x64xf32>
    %7 = vector.extract_strided_slice %5 {offsets = [32, 0], sizes = [1, 64], strides = [1, 1]} : vector<105x64xf32> to vector<1x64xf32>
    %8 = vector.extract_strided_slice %5 {offsets = [40, 0], sizes = [64, 32], strides = [1, 1]} : vector<105x64xf32> to vector<64x32xf32>
    %9 = vector.extract_strided_slice %5 {offsets = [104, 0], sizes = [1, 32], strides = [1, 1]} : vector<105x64xf32> to vector<1x32xf32>
    %c0_7 = arith.constant 0 : index
    %10 = memref.load %arg4[%c0_7] : memref<6xf32, #tpu.memory_space<smem>>
    %c1 = arith.constant 1 : index
    %11 = memref.load %arg4[%c1] : memref<6xf32, #tpu.memory_space<smem>>
    %c2 = arith.constant 2 : index
    %12 = memref.load %arg4[%c2] : memref<6xf32, #tpu.memory_space<smem>>
    %c3 = arith.constant 3 : index
    %13 = memref.load %arg4[%c3] : memref<6xf32, #tpu.memory_space<smem>>
    %c4 = arith.constant 4 : index
    %14 = memref.load %arg4[%c4] : memref<6xf32, #tpu.memory_space<smem>>
    %c5 = arith.constant 5 : index
    %15 = memref.load %arg4[%c5] : memref<6xf32, #tpu.memory_space<smem>>
    %cst = arith.constant dense<0.000000e+00> : vector<16xf32>
    %16 = vector.multi_reduction <add>, %0, %cst [1] : vector<16x32xf32> to vector<16xf32>
    %17 = vector.shape_cast %16 : vector<16xf32> to vector<16x1xf32>
    %cst_8 = arith.constant 3.200000e+01 : f32
    %18 = vector.broadcast %cst_8 : f32 to vector<16x1xf32>
    %19 = arith.divf %17, %18 : vector<16x1xf32>
    %20 = vector.broadcast %19 : vector<16x1xf32> to vector<16x32xf32>
    %21 = arith.subf %0, %20 : vector<16x32xf32>
    %22 = arith.mulf %21, %21 : vector<16x32xf32>
    %cst_9 = arith.constant dense<0.000000e+00> : vector<16xf32>
    %23 = vector.multi_reduction <add>, %22, %cst_9 [1] : vector<16x32xf32> to vector<16xf32>
    %24 = vector.shape_cast %23 : vector<16xf32> to vector<16x1xf32>
    %cst_10 = arith.constant 0.0322580636 : f32
    %25 = vector.broadcast %cst_10 : f32 to vector<16x1xf32>
    %26 = arith.mulf %24, %25 : vector<16x1xf32>
    %27 = math.sqrt %26 : vector<16x1xf32>
    %28 = vector.broadcast %19 : vector<16x1xf32> to vector<16x32xf32>
    %29 = arith.subf %0, %28 : vector<16x32xf32>
    %30 = vector.broadcast %10 : f32 to vector<16x32xf32>
    %31 = arith.mulf %30, %29 : vector<16x32xf32>
    %cst_11 = arith.constant 9.99999997E-7 : f32
    %32 = vector.broadcast %cst_11 : f32 to vector<16x1xf32>
    %33 = arith.addf %27, %32 : vector<16x1xf32>
    %34 = vector.broadcast %33 : vector<16x1xf32> to vector<16x32xf32>
    %35 = arith.divf %31, %34 : vector<16x32xf32>
    %36 = vector.broadcast %11 : f32 to vector<16x32xf32>
    %37 = arith.addf %35, %36 : vector<16x32xf32>
    %38 = vector.extract_strided_slice %3 {offsets = [0, 0], sizes = [32, 96], strides = [1, 1]} : vector<32x256xf32> to vector<32x96xf32>
    %cst_12 = arith.constant dense<0.000000e+00> : vector<16x96xf32>
    %39 = tpu.matmul %37, %38, %cst_12 {dimension_numbers = #tpu.dot_dimension_numbers<[1], [0], [0], [1], [0, 0, 1, 1], [], []>} : vector<16x32xf32>, vector<32x96xf32>, vector<16x96xf32> -> vector<16x96xf32>
    %40 = vector.extract_strided_slice %4 {offsets = [0, 0], sizes = [1, 96], strides = [1, 1]} : vector<1x256xf32> to vector<1x96xf32>
    %41 = vector.broadcast %40 : vector<1x96xf32> to vector<16x96xf32>
    %42 = arith.addf %39, %41 : vector<16x96xf32>
    %43 = vector.extract_strided_slice %42 {offsets = [0, 0], sizes = [16, 32], strides = [1, 1]} : vector<16x96xf32> to vector<16x32xf32>
    %44 = vector.extract_strided_slice %42 {offsets = [0, 32], sizes = [16, 32], strides = [1, 1]} : vector<16x96xf32> to vector<16x32xf32>
    %45 = vector.extract_strided_slice %42 {offsets = [0, 64], sizes = [16, 32], strides = [1, 1]} : vector<16x96xf32> to vector<16x32xf32>
    %46 = vector.extract_strided_slice %3 {offsets = [0, 96], sizes = [32, 32], strides = [1, 1]} : vector<32x256xf32> to vector<32x32xf32>
    %47 = vector.extract_strided_slice %4 {offsets = [0, 96], sizes = [1, 32], strides = [1, 1]} : vector<1x256xf32> to vector<1x32xf32>
    %48 = vector.extract_strided_slice %43 {offsets = [0, 0], sizes = [16, 8], strides = [1, 1]} : vector<16x32xf32> to vector<16x8xf32>
    %49 = vector.shape_cast %48 : vector<16x8xf32> to vector<2x8x8xf32>
    %50 = vector.extract_strided_slice %44 {offsets = [0, 0], sizes = [16, 8], strides = [1, 1]} : vector<16x32xf32> to vector<16x8xf32>
    %51 = vector.shape_cast %50 : vector<16x8xf32> to vector<2x8x8xf32>
    %52 = vector.extract_strided_slice %45 {offsets = [0, 0], sizes = [16, 8], strides = [1, 1]} : vector<16x32xf32> to vector<16x8xf32>
    %53 = vector.shape_cast %52 : vector<16x8xf32> to vector<2x8x8xf32>
    "tpu.trace_start"() <{level = 10 : i32, message = "bqd,bkd->bqk"}> : () -> ()
    %cst_13 = arith.constant dense<0.000000e+00> : vector<2x8x8xf32>
    %54 = tpu.matmul %49, %51, %cst_13 {dimension_numbers = #tpu.dot_dimension_numbers<[2], [2], [1], [1], [0, 0, 0, 1, 1, 1], [0], [0]>} : vector<2x8x8xf32>, vector<2x8x8xf32>, vector<2x8x8xf32> -> vector<2x8x8xf32>
    "tpu.trace_stop"() : () -> ()
    %cst_14 = arith.constant 2.82842708 : f32
    %55 = vector.broadcast %cst_14 : f32 to vector<2x8x8xf32>
    %56 = arith.divf %54, %55 : vector<2x8x8xf32>
    %57 = math.floor %56 : vector<2x8x8xf32>
    %cst_15 = arith.constant dense<0xFF800000> : vector<2x8xf32>
    %58 = vector.multi_reduction <maximumf>, %57, %cst_15 [2] : vector<2x8x8xf32> to vector<2x8xf32>
    %59 = vector.shape_cast %58 : vector<2x8xf32> to vector<2x8x1xf32>
    %60 = vector.broadcast %59 : vector<2x8x1xf32> to vector<2x8x8xf32>
    %61 = arith.subf %57, %60 : vector<2x8x8xf32>
    %62 = math.exp %61 : vector<2x8x8xf32>
    %cst_16 = arith.constant dense<0.000000e+00> : vector<2x8xf32>
    %63 = vector.multi_reduction <add>, %62, %cst_16 [2] : vector<2x8x8xf32> to vector<2x8xf32>
    %64 = vector.shape_cast %63 : vector<2x8xf32> to vector<2x8x1xf32>
    %65 = vector.broadcast %64 : vector<2x8x1xf32> to vector<2x8x8xf32>
    %66 = arith.divf %62, %65 : vector<2x8x8xf32>
    "tpu.trace_start"() <{level = 10 : i32, message = "bqk,bkd->bqd"}> : () -> ()
    %cst_17 = arith.constant dense<0.000000e+00> : vector<2x8x8xf32>
    %67 = tpu.matmul %66, %53, %cst_17 {dimension_numbers = #tpu.dot_dimension_numbers<[2], [1], [1], [2], [0, 0, 0, 1, 1, 2], [0], [0]>} : vector<2x8x8xf32>, vector<2x8x8xf32>, vector<2x8x8xf32> -> vector<2x8x8xf32>
    "tpu.trace_stop"() : () -> ()
    %68 = vector.shape_cast %67 : vector<2x8x8xf32> to vector<16x8xf32>
    %69 = vector.extract_strided_slice %43 {offsets = [0, 8], sizes = [16, 8], strides = [1, 1]} : vector<16x32xf32> to vector<16x8xf32>
    %70 = vector.shape_cast %69 : vector<16x8xf32> to vector<2x8x8xf32>
    %71 = vector.extract_strided_slice %44 {offsets = [0, 8], sizes = [16, 8], strides = [1, 1]} : vector<16x32xf32> to vector<16x8xf32>
    %72 = vector.shape_cast %71 : vector<16x8xf32> to vector<2x8x8xf32>
    %73 = vector.extract_strided_slice %45 {offsets = [0, 8], sizes = [16, 8], strides = [1, 1]} : vector<16x32xf32> to vector<16x8xf32>
    %74 = vector.shape_cast %73 : vector<16x8xf32> to vector<2x8x8xf32>
    "tpu.trace_start"() <{level = 10 : i32, message = "bqd,bkd->bqk"}> : () -> ()
    %cst_18 = arith.constant dense<0.000000e+00> : vector<2x8x8xf32>
    %75 = tpu.matmul %70, %72, %cst_18 {dimension_numbers = #tpu.dot_dimension_numbers<[2], [2], [1], [1], [0, 0, 0, 1, 1, 1], [0], [0]>} : vector<2x8x8xf32>, vector<2x8x8xf32>, vector<2x8x8xf32> -> vector<2x8x8xf32>
    "tpu.trace_stop"() : () -> ()
    %cst_19 = arith.constant 2.82842708 : f32
    %76 = vector.broadcast %cst_19 : f32 to vector<2x8x8xf32>
    %77 = arith.divf %75, %76 : vector<2x8x8xf32>
    %78 = math.floor %77 : vector<2x8x8xf32>
    %cst_20 = arith.constant dense<0xFF800000> : vector<2x8xf32>
    %79 = vector.multi_reduction <maximumf>, %78, %cst_20 [2] : vector<2x8x8xf32> to vector<2x8xf32>
    %80 = vector.shape_cast %79 : vector<2x8xf32> to vector<2x8x1xf32>
    %81 = vector.broadcast %80 : vector<2x8x1xf32> to vector<2x8x8xf32>
    %82 = arith.subf %78, %81 : vector<2x8x8xf32>
    %83 = math.exp %82 : vector<2x8x8xf32>
    %cst_21 = arith.constant dense<0.000000e+00> : vector<2x8xf32>
    %84 = vector.multi_reduction <add>, %83, %cst_21 [2] : vector<2x8x8xf32> to vector<2x8xf32>
    %85 = vector.shape_cast %84 : vector<2x8xf32> to vector<2x8x1xf32>
    %86 = vector.broadcast %85 : vector<2x8x1xf32> to vector<2x8x8xf32>
    %87 = arith.divf %83, %86 : vector<2x8x8xf32>
    "tpu.trace_start"() <{level = 10 : i32, message = "bqk,bkd->bqd"}> : () -> ()
    %cst_22 = arith.constant dense<0.000000e+00> : vector<2x8x8xf32>
    %88 = tpu.matmul %87, %74, %cst_22 {dimension_numbers = #tpu.dot_dimension_numbers<[2], [1], [1], [2], [0, 0, 0, 1, 1, 2], [0], [0]>} : vector<2x8x8xf32>, vector<2x8x8xf32>, vector<2x8x8xf32> -> vector<2x8x8xf32>
    "tpu.trace_stop"() : () -> ()
    %89 = vector.shape_cast %88 : vector<2x8x8xf32> to vector<16x8xf32>
    %90 = vector.extract_strided_slice %43 {offsets = [0, 16], sizes = [16, 8], strides = [1, 1]} : vector<16x32xf32> to vector<16x8xf32>
    %91 = vector.shape_cast %90 : vector<16x8xf32> to vector<2x8x8xf32>
    %92 = vector.extract_strided_slice %44 {offsets = [0, 16], sizes = [16, 8], strides = [1, 1]} : vector<16x32xf32> to vector<16x8xf32>
    %93 = vector.shape_cast %92 : vector<16x8xf32> to vector<2x8x8xf32>
    %94 = vector.extract_strided_slice %45 {offsets = [0, 16], sizes = [16, 8], strides = [1, 1]} : vector<16x32xf32> to vector<16x8xf32>
    %95 = vector.shape_cast %94 : vector<16x8xf32> to vector<2x8x8xf32>
    "tpu.trace_start"() <{level = 10 : i32, message = "bqd,bkd->bqk"}> : () -> ()
    %cst_23 = arith.constant dense<0.000000e+00> : vector<2x8x8xf32>
    %96 = tpu.matmul %91, %93, %cst_23 {dimension_numbers = #tpu.dot_dimension_numbers<[2], [2], [1], [1], [0, 0, 0, 1, 1, 1], [0], [0]>} : vector<2x8x8xf32>, vector<2x8x8xf32>, vector<2x8x8xf32> -> vector<2x8x8xf32>
    "tpu.trace_stop"() : () -> ()
    %cst_24 = arith.constant 2.82842708 : f32
    %97 = vector.broadcast %cst_24 : f32 to vector<2x8x8xf32>
    %98 = arith.divf %96, %97 : vector<2x8x8xf32>
    %99 = math.floor %98 : vector<2x8x8xf32>
    %cst_25 = arith.constant dense<0xFF800000> : vector<2x8xf32>
    %100 = vector.multi_reduction <maximumf>, %99, %cst_25 [2] : vector<2x8x8xf32> to vector<2x8xf32>
    %101 = vector.shape_cast %100 : vector<2x8xf32> to vector<2x8x1xf32>
    %102 = vector.broadcast %101 : vector<2x8x1xf32> to vector<2x8x8xf32>
    %103 = arith.subf %99, %102 : vector<2x8x8xf32>
    %104 = math.exp %103 : vector<2x8x8xf32>
    %cst_26 = arith.constant dense<0.000000e+00> : vector<2x8xf32>
    %105 = vector.multi_reduction <add>, %104, %cst_26 [2] : vector<2x8x8xf32> to vector<2x8xf32>
    %106 = vector.shape_cast %105 : vector<2x8xf32> to vector<2x8x1xf32>
    %107 = vector.broadcast %106 : vector<2x8x1xf32> to vector<2x8x8xf32>
    %108 = arith.divf %104, %107 : vector<2x8x8xf32>
    "tpu.trace_start"() <{level = 10 : i32, message = "bqk,bkd->bqd"}> : () -> ()
    %cst_27 = arith.constant dense<0.000000e+00> : vector<2x8x8xf32>
    %109 = tpu.matmul %108, %95, %cst_27 {dimension_numbers = #tpu.dot_dimension_numbers<[2], [1], [1], [2], [0, 0, 0, 1, 1, 2], [0], [0]>} : vector<2x8x8xf32>, vector<2x8x8xf32>, vector<2x8x8xf32> -> vector<2x8x8xf32>
    "tpu.trace_stop"() : () -> ()
    %110 = vector.shape_cast %109 : vector<2x8x8xf32> to vector<16x8xf32>
    %111 = vector.extract_strided_slice %43 {offsets = [0, 24], sizes = [16, 8], strides = [1, 1]} : vector<16x32xf32> to vector<16x8xf32>
    %112 = vector.shape_cast %111 : vector<16x8xf32> to vector<2x8x8xf32>
    %113 = vector.extract_strided_slice %44 {offsets = [0, 24], sizes = [16, 8], strides = [1, 1]} : vector<16x32xf32> to vector<16x8xf32>
    %114 = vector.shape_cast %113 : vector<16x8xf32> to vector<2x8x8xf32>
    %115 = vector.extract_strided_slice %45 {offsets = [0, 24], sizes = [16, 8], strides = [1, 1]} : vector<16x32xf32> to vector<16x8xf32>
    %116 = vector.shape_cast %115 : vector<16x8xf32> to vector<2x8x8xf32>
    "tpu.trace_start"() <{level = 10 : i32, message = "bqd,bkd->bqk"}> : () -> ()
    %cst_28 = arith.constant dense<0.000000e+00> : vector<2x8x8xf32>
    %117 = tpu.matmul %112, %114, %cst_28 {dimension_numbers = #tpu.dot_dimension_numbers<[2], [2], [1], [1], [0, 0, 0, 1, 1, 1], [0], [0]>} : vector<2x8x8xf32>, vector<2x8x8xf32>, vector<2x8x8xf32> -> vector<2x8x8xf32>
    "tpu.trace_stop"() : () -> ()
    %cst_29 = arith.constant 2.82842708 : f32
    %118 = vector.broadcast %cst_29 : f32 to vector<2x8x8xf32>
    %119 = arith.divf %117, %118 : vector<2x8x8xf32>
    %120 = math.floor %119 : vector<2x8x8xf32>
    %cst_30 = arith.constant dense<0xFF800000> : vector<2x8xf32>
    %121 = vector.multi_reduction <maximumf>, %120, %cst_30 [2] : vector<2x8x8xf32> to vector<2x8xf32>
    %122 = vector.shape_cast %121 : vector<2x8xf32> to vector<2x8x1xf32>
    %123 = vector.broadcast %122 : vector<2x8x1xf32> to vector<2x8x8xf32>
    %124 = arith.subf %120, %123 : vector<2x8x8xf32>
    %125 = math.exp %124 : vector<2x8x8xf32>
    %cst_31 = arith.constant dense<0.000000e+00> : vector<2x8xf32>
    %126 = vector.multi_reduction <add>, %125, %cst_31 [2] : vector<2x8x8xf32> to vector<2x8xf32>
    %127 = vector.shape_cast %126 : vector<2x8xf32> to vector<2x8x1xf32>
    %128 = vector.broadcast %127 : vector<2x8x1xf32> to vector<2x8x8xf32>
    %129 = arith.divf %125, %128 : vector<2x8x8xf32>
    "tpu.trace_start"() <{level = 10 : i32, message = "bqk,bkd->bqd"}> : () -> ()
    %cst_32 = arith.constant dense<0.000000e+00> : vector<2x8x8xf32>
    %130 = tpu.matmul %129, %116, %cst_32 {dimension_numbers = #tpu.dot_dimension_numbers<[2], [1], [1], [2], [0, 0, 0, 1, 1, 2], [0], [0]>} : vector<2x8x8xf32>, vector<2x8x8xf32>, vector<2x8x8xf32> -> vector<2x8x8xf32>
    "tpu.trace_stop"() : () -> ()
    %131 = vector.shape_cast %130 : vector<2x8x8xf32> to vector<16x8xf32>
    %132 = tpu.concatenate %68, %89, %110, %131 in 1 : vector<16x8xf32>, vector<16x8xf32>, vector<16x8xf32>, vector<16x8xf32> -> vector<16x32xf32>
    %cst_33 = arith.constant dense<0.000000e+00> : vector<16x32xf32>
    %133 = tpu.matmul %132, %46, %cst_33 {dimension_numbers = #tpu.dot_dimension_numbers<[1], [0], [0], [1], [0, 0, 1, 1], [], []>} : vector<16x32xf32>, vector<32x32xf32>, vector<16x32xf32> -> vector<16x32xf32>
    %134 = vector.broadcast %47 : vector<1x32xf32> to vector<16x32xf32>
    %135 = arith.addf %133, %134 : vector<16x32xf32>
    %136 = arith.addf %0, %135 : vector<16x32xf32>
    %cst_34 = arith.constant dense<0.000000e+00> : vector<16xf32>
    %137 = vector.multi_reduction <add>, %136, %cst_34 [1] : vector<16x32xf32> to vector<16xf32>
    %138 = vector.shape_cast %137 : vector<16xf32> to vector<16x1xf32>
    %cst_35 = arith.constant 3.200000e+01 : f32
    %139 = vector.broadcast %cst_35 : f32 to vector<16x1xf32>
    %140 = arith.divf %138, %139 : vector<16x1xf32>
    %141 = vector.broadcast %140 : vector<16x1xf32> to vector<16x32xf32>
    %142 = arith.subf %136, %141 : vector<16x32xf32>
    %143 = arith.mulf %142, %142 : vector<16x32xf32>
    %cst_36 = arith.constant dense<0.000000e+00> : vector<16xf32>
    %144 = vector.multi_reduction <add>, %143, %cst_36 [1] : vector<16x32xf32> to vector<16xf32>
    %145 = vector.shape_cast %144 : vector<16xf32> to vector<16x1xf32>
    %cst_37 = arith.constant 0.0322580636 : f32
    %146 = vector.broadcast %cst_37 : f32 to vector<16x1xf32>
    %147 = arith.mulf %145, %146 : vector<16x1xf32>
    %148 = math.sqrt %147 : vector<16x1xf32>
    %149 = vector.broadcast %140 : vector<16x1xf32> to vector<16x32xf32>
    %150 = arith.subf %136, %149 : vector<16x32xf32>
    %151 = vector.broadcast %12 : f32 to vector<16x32xf32>
    %152 = arith.mulf %151, %150 : vector<16x32xf32>
    %cst_38 = arith.constant 9.99999997E-7 : f32
    %153 = vector.broadcast %cst_38 : f32 to vector<16x1xf32>
    %154 = arith.addf %148, %153 : vector<16x1xf32>
    %155 = vector.broadcast %154 : vector<16x1xf32> to vector<16x32xf32>
    %156 = arith.divf %152, %155 : vector<16x32xf32>
    %157 = vector.broadcast %13 : f32 to vector<16x32xf32>
    %158 = arith.addf %156, %157 : vector<16x32xf32>
    %159 = vector.extract_strided_slice %3 {offsets = [0, 128], sizes = [32, 32], strides = [1, 1]} : vector<32x256xf32> to vector<32x32xf32>
    %cst_39 = arith.constant dense<0.000000e+00> : vector<16x32xf32>
    %160 = tpu.matmul %158, %159, %cst_39 {dimension_numbers = #tpu.dot_dimension_numbers<[1], [0], [0], [1], [0, 0, 1, 1], [], []>} : vector<16x32xf32>, vector<32x32xf32>, vector<16x32xf32> -> vector<16x32xf32>
    %161 = vector.extract_strided_slice %4 {offsets = [0, 128], sizes = [1, 32], strides = [1, 1]} : vector<1x256xf32> to vector<1x32xf32>
    %162 = vector.broadcast %161 : vector<1x32xf32> to vector<16x32xf32>
    %163 = arith.addf %160, %162 : vector<16x32xf32>
    %164 = vector.extract_strided_slice %3 {offsets = [0, 160], sizes = [32, 64], strides = [1, 1]} : vector<32x256xf32> to vector<32x64xf32>
    %cst_40 = arith.constant dense<0.000000e+00> : vector<16x64xf32>
    %165 = tpu.matmul %1, %164, %cst_40 {dimension_numbers = #tpu.dot_dimension_numbers<[1], [0], [0], [1], [0, 0, 1, 1], [], []>} : vector<16x32xf32>, vector<32x64xf32>, vector<16x64xf32> -> vector<16x64xf32>
    %166 = vector.extract_strided_slice %4 {offsets = [0, 160], sizes = [1, 64], strides = [1, 1]} : vector<1x256xf32> to vector<1x64xf32>
    %167 = vector.broadcast %166 : vector<1x64xf32> to vector<16x64xf32>
    %168 = arith.addf %165, %167 : vector<16x64xf32>
    %169 = vector.extract_strided_slice %168 {offsets = [0, 0], sizes = [16, 32], strides = [1, 1]} : vector<16x64xf32> to vector<16x32xf32>
    %170 = vector.extract_strided_slice %168 {offsets = [0, 32], sizes = [16, 32], strides = [1, 1]} : vector<16x64xf32> to vector<16x32xf32>
    %171 = vector.extract_strided_slice %3 {offsets = [0, 224], sizes = [32, 32], strides = [1, 1]} : vector<32x256xf32> to vector<32x32xf32>
    %172 = vector.extract_strided_slice %4 {offsets = [0, 224], sizes = [1, 32], strides = [1, 1]} : vector<1x256xf32> to vector<1x32xf32>
    %173 = vector.extract_strided_slice %163 {offsets = [0, 0], sizes = [16, 8], strides = [1, 1]} : vector<16x32xf32> to vector<16x8xf32>
    %174 = vector.shape_cast %173 : vector<16x8xf32> to vector<2x8x8xf32>
    %175 = vector.extract_strided_slice %169 {offsets = [0, 0], sizes = [16, 8], strides = [1, 1]} : vector<16x32xf32> to vector<16x8xf32>
    %176 = vector.shape_cast %175 : vector<16x8xf32> to vector<2x8x8xf32>
    %177 = vector.extract_strided_slice %170 {offsets = [0, 0], sizes = [16, 8], strides = [1, 1]} : vector<16x32xf32> to vector<16x8xf32>
    %178 = vector.shape_cast %177 : vector<16x8xf32> to vector<2x8x8xf32>
    "tpu.trace_start"() <{level = 10 : i32, message = "bqd,bkd->bqk"}> : () -> ()
    %cst_41 = arith.constant dense<0.000000e+00> : vector<2x8x8xf32>
    %179 = tpu.matmul %174, %176, %cst_41 {dimension_numbers = #tpu.dot_dimension_numbers<[2], [2], [1], [1], [0, 0, 0, 1, 1, 1], [0], [0]>} : vector<2x8x8xf32>, vector<2x8x8xf32>, vector<2x8x8xf32> -> vector<2x8x8xf32>
    "tpu.trace_stop"() : () -> ()
    %cst_42 = arith.constant 2.82842708 : f32
    %180 = vector.broadcast %cst_42 : f32 to vector<2x8x8xf32>
    %181 = arith.divf %179, %180 : vector<2x8x8xf32>
    %182 = math.floor %181 : vector<2x8x8xf32>
    %cst_43 = arith.constant dense<0xFF800000> : vector<2x8xf32>
    %183 = vector.multi_reduction <maximumf>, %182, %cst_43 [2] : vector<2x8x8xf32> to vector<2x8xf32>
    %184 = vector.shape_cast %183 : vector<2x8xf32> to vector<2x8x1xf32>
    %185 = vector.broadcast %184 : vector<2x8x1xf32> to vector<2x8x8xf32>
    %186 = arith.subf %182, %185 : vector<2x8x8xf32>
    %187 = math.exp %186 : vector<2x8x8xf32>
    %cst_44 = arith.constant dense<0.000000e+00> : vector<2x8xf32>
    %188 = vector.multi_reduction <add>, %187, %cst_44 [2] : vector<2x8x8xf32> to vector<2x8xf32>
    %189 = vector.shape_cast %188 : vector<2x8xf32> to vector<2x8x1xf32>
    %190 = vector.broadcast %189 : vector<2x8x1xf32> to vector<2x8x8xf32>
    %191 = arith.divf %187, %190 : vector<2x8x8xf32>
    "tpu.trace_start"() <{level = 10 : i32, message = "bqk,bkd->bqd"}> : () -> ()
    %cst_45 = arith.constant dense<0.000000e+00> : vector<2x8x8xf32>
    %192 = tpu.matmul %191, %178, %cst_45 {dimension_numbers = #tpu.dot_dimension_numbers<[2], [1], [1], [2], [0, 0, 0, 1, 1, 2], [0], [0]>} : vector<2x8x8xf32>, vector<2x8x8xf32>, vector<2x8x8xf32> -> vector<2x8x8xf32>
    "tpu.trace_stop"() : () -> ()
    %193 = vector.shape_cast %192 : vector<2x8x8xf32> to vector<16x8xf32>
    %194 = vector.extract_strided_slice %163 {offsets = [0, 8], sizes = [16, 8], strides = [1, 1]} : vector<16x32xf32> to vector<16x8xf32>
    %195 = vector.shape_cast %194 : vector<16x8xf32> to vector<2x8x8xf32>
    %196 = vector.extract_strided_slice %169 {offsets = [0, 8], sizes = [16, 8], strides = [1, 1]} : vector<16x32xf32> to vector<16x8xf32>
    %197 = vector.shape_cast %196 : vector<16x8xf32> to vector<2x8x8xf32>
    %198 = vector.extract_strided_slice %170 {offsets = [0, 8], sizes = [16, 8], strides = [1, 1]} : vector<16x32xf32> to vector<16x8xf32>
    %199 = vector.shape_cast %198 : vector<16x8xf32> to vector<2x8x8xf32>
    "tpu.trace_start"() <{level = 10 : i32, message = "bqd,bkd->bqk"}> : () -> ()
    %cst_46 = arith.constant dense<0.000000e+00> : vector<2x8x8xf32>
    %200 = tpu.matmul %195, %197, %cst_46 {dimension_numbers = #tpu.dot_dimension_numbers<[2], [2], [1], [1], [0, 0, 0, 1, 1, 1], [0], [0]>} : vector<2x8x8xf32>, vector<2x8x8xf32>, vector<2x8x8xf32> -> vector<2x8x8xf32>
    "tpu.trace_stop"() : () -> ()
    %cst_47 = arith.constant 2.82842708 : f32
    %201 = vector.broadcast %cst_47 : f32 to vector<2x8x8xf32>
    %202 = arith.divf %200, %201 : vector<2x8x8xf32>
    %203 = math.floor %202 : vector<2x8x8xf32>
    %cst_48 = arith.constant dense<0xFF800000> : vector<2x8xf32>
    %204 = vector.multi_reduction <maximumf>, %203, %cst_48 [2] : vector<2x8x8xf32> to vector<2x8xf32>
    %205 = vector.shape_cast %204 : vector<2x8xf32> to vector<2x8x1xf32>
    %206 = vector.broadcast %205 : vector<2x8x1xf32> to vector<2x8x8xf32>
    %207 = arith.subf %203, %206 : vector<2x8x8xf32>
    %208 = math.exp %207 : vector<2x8x8xf32>
    %cst_49 = arith.constant dense<0.000000e+00> : vector<2x8xf32>
    %209 = vector.multi_reduction <add>, %208, %cst_49 [2] : vector<2x8x8xf32> to vector<2x8xf32>
    %210 = vector.shape_cast %209 : vector<2x8xf32> to vector<2x8x1xf32>
    %211 = vector.broadcast %210 : vector<2x8x1xf32> to vector<2x8x8xf32>
    %212 = arith.divf %208, %211 : vector<2x8x8xf32>
    "tpu.trace_start"() <{level = 10 : i32, message = "bqk,bkd->bqd"}> : () -> ()
    %cst_50 = arith.constant dense<0.000000e+00> : vector<2x8x8xf32>
    %213 = tpu.matmul %212, %199, %cst_50 {dimension_numbers = #tpu.dot_dimension_numbers<[2], [1], [1], [2], [0, 0, 0, 1, 1, 2], [0], [0]>} : vector<2x8x8xf32>, vector<2x8x8xf32>, vector<2x8x8xf32> -> vector<2x8x8xf32>
    "tpu.trace_stop"() : () -> ()
    %214 = vector.shape_cast %213 : vector<2x8x8xf32> to vector<16x8xf32>
    %215 = vector.extract_strided_slice %163 {offsets = [0, 16], sizes = [16, 8], strides = [1, 1]} : vector<16x32xf32> to vector<16x8xf32>
    %216 = vector.shape_cast %215 : vector<16x8xf32> to vector<2x8x8xf32>
    %217 = vector.extract_strided_slice %169 {offsets = [0, 16], sizes = [16, 8], strides = [1, 1]} : vector<16x32xf32> to vector<16x8xf32>
    %218 = vector.shape_cast %217 : vector<16x8xf32> to vector<2x8x8xf32>
    %219 = vector.extract_strided_slice %170 {offsets = [0, 16], sizes = [16, 8], strides = [1, 1]} : vector<16x32xf32> to vector<16x8xf32>
    %220 = vector.shape_cast %219 : vector<16x8xf32> to vector<2x8x8xf32>
    "tpu.trace_start"() <{level = 10 : i32, message = "bqd,bkd->bqk"}> : () -> ()
    %cst_51 = arith.constant dense<0.000000e+00> : vector<2x8x8xf32>
    %221 = tpu.matmul %216, %218, %cst_51 {dimension_numbers = #tpu.dot_dimension_numbers<[2], [2], [1], [1], [0, 0, 0, 1, 1, 1], [0], [0]>} : vector<2x8x8xf32>, vector<2x8x8xf32>, vector<2x8x8xf32> -> vector<2x8x8xf32>
    "tpu.trace_stop"() : () -> ()
    %cst_52 = arith.constant 2.82842708 : f32
    %222 = vector.broadcast %cst_52 : f32 to vector<2x8x8xf32>
    %223 = arith.divf %221, %222 : vector<2x8x8xf32>
    %224 = math.floor %223 : vector<2x8x8xf32>
    %cst_53 = arith.constant dense<0xFF800000> : vector<2x8xf32>
    %225 = vector.multi_reduction <maximumf>, %224, %cst_53 [2] : vector<2x8x8xf32> to vector<2x8xf32>
    %226 = vector.shape_cast %225 : vector<2x8xf32> to vector<2x8x1xf32>
    %227 = vector.broadcast %226 : vector<2x8x1xf32> to vector<2x8x8xf32>
    %228 = arith.subf %224, %227 : vector<2x8x8xf32>
    %229 = math.exp %228 : vector<2x8x8xf32>
    %cst_54 = arith.constant dense<0.000000e+00> : vector<2x8xf32>
    %230 = vector.multi_reduction <add>, %229, %cst_54 [2] : vector<2x8x8xf32> to vector<2x8xf32>
    %231 = vector.shape_cast %230 : vector<2x8xf32> to vector<2x8x1xf32>
    %232 = vector.broadcast %231 : vector<2x8x1xf32> to vector<2x8x8xf32>
    %233 = arith.divf %229, %232 : vector<2x8x8xf32>
    "tpu.trace_start"() <{level = 10 : i32, message = "bqk,bkd->bqd"}> : () -> ()
    %cst_55 = arith.constant dense<0.000000e+00> : vector<2x8x8xf32>
    %234 = tpu.matmul %233, %220, %cst_55 {dimension_numbers = #tpu.dot_dimension_numbers<[2], [1], [1], [2], [0, 0, 0, 1, 1, 2], [0], [0]>} : vector<2x8x8xf32>, vector<2x8x8xf32>, vector<2x8x8xf32> -> vector<2x8x8xf32>
    "tpu.trace_stop"() : () -> ()
    %235 = vector.shape_cast %234 : vector<2x8x8xf32> to vector<16x8xf32>
    %236 = vector.extract_strided_slice %163 {offsets = [0, 24], sizes = [16, 8], strides = [1, 1]} : vector<16x32xf32> to vector<16x8xf32>
    %237 = vector.shape_cast %236 : vector<16x8xf32> to vector<2x8x8xf32>
    %238 = vector.extract_strided_slice %169 {offsets = [0, 24], sizes = [16, 8], strides = [1, 1]} : vector<16x32xf32> to vector<16x8xf32>
    %239 = vector.shape_cast %238 : vector<16x8xf32> to vector<2x8x8xf32>
    %240 = vector.extract_strided_slice %170 {offsets = [0, 24], sizes = [16, 8], strides = [1, 1]} : vector<16x32xf32> to vector<16x8xf32>
    %241 = vector.shape_cast %240 : vector<16x8xf32> to vector<2x8x8xf32>
    "tpu.trace_start"() <{level = 10 : i32, message = "bqd,bkd->bqk"}> : () -> ()
    %cst_56 = arith.constant dense<0.000000e+00> : vector<2x8x8xf32>
    %242 = tpu.matmul %237, %239, %cst_56 {dimension_numbers = #tpu.dot_dimension_numbers<[2], [2], [1], [1], [0, 0, 0, 1, 1, 1], [0], [0]>} : vector<2x8x8xf32>, vector<2x8x8xf32>, vector<2x8x8xf32> -> vector<2x8x8xf32>
    "tpu.trace_stop"() : () -> ()
    %cst_57 = arith.constant 2.82842708 : f32
    %243 = vector.broadcast %cst_57 : f32 to vector<2x8x8xf32>
    %244 = arith.divf %242, %243 : vector<2x8x8xf32>
    %245 = math.floor %244 : vector<2x8x8xf32>
    %cst_58 = arith.constant dense<0xFF800000> : vector<2x8xf32>
    %246 = vector.multi_reduction <maximumf>, %245, %cst_58 [2] : vector<2x8x8xf32> to vector<2x8xf32>
    %247 = vector.shape_cast %246 : vector<2x8xf32> to vector<2x8x1xf32>
    %248 = vector.broadcast %247 : vector<2x8x1xf32> to vector<2x8x8xf32>
    %249 = arith.subf %245, %248 : vector<2x8x8xf32>
    %250 = math.exp %249 : vector<2x8x8xf32>
    %cst_59 = arith.constant dense<0.000000e+00> : vector<2x8xf32>
    %251 = vector.multi_reduction <add>, %250, %cst_59 [2] : vector<2x8x8xf32> to vector<2x8xf32>
    %252 = vector.shape_cast %251 : vector<2x8xf32> to vector<2x8x1xf32>
    %253 = vector.broadcast %252 : vector<2x8x1xf32> to vector<2x8x8xf32>
    %254 = arith.divf %250, %253 : vector<2x8x8xf32>
    "tpu.trace_start"() <{level = 10 : i32, message = "bqk,bkd->bqd"}> : () -> ()
    %cst_60 = arith.constant dense<0.000000e+00> : vector<2x8x8xf32>
    %255 = tpu.matmul %254, %241, %cst_60 {dimension_numbers = #tpu.dot_dimension_numbers<[2], [1], [1], [2], [0, 0, 0, 1, 1, 2], [0], [0]>} : vector<2x8x8xf32>, vector<2x8x8xf32>, vector<2x8x8xf32> -> vector<2x8x8xf32>
    "tpu.trace_stop"() : () -> ()
    %256 = vector.shape_cast %255 : vector<2x8x8xf32> to vector<16x8xf32>
    %257 = tpu.concatenate %193, %214, %235, %256 in 1 : vector<16x8xf32>, vector<16x8xf32>, vector<16x8xf32>, vector<16x8xf32> -> vector<16x32xf32>
    %cst_61 = arith.constant dense<0.000000e+00> : vector<16x32xf32>
    %258 = tpu.matmul %257, %171, %cst_61 {dimension_numbers = #tpu.dot_dimension_numbers<[1], [0], [0], [1], [0, 0, 1, 1], [], []>} : vector<16x32xf32>, vector<32x32xf32>, vector<16x32xf32> -> vector<16x32xf32>
    %259 = vector.broadcast %172 : vector<1x32xf32> to vector<16x32xf32>
    %260 = arith.addf %258, %259 : vector<16x32xf32>
    %261 = arith.addf %136, %260 : vector<16x32xf32>
    %cst_62 = arith.constant dense<0.000000e+00> : vector<16xf32>
    %262 = vector.multi_reduction <add>, %261, %cst_62 [1] : vector<16x32xf32> to vector<16xf32>
    %263 = vector.shape_cast %262 : vector<16xf32> to vector<16x1xf32>
    %cst_63 = arith.constant 3.200000e+01 : f32
    %264 = vector.broadcast %cst_63 : f32 to vector<16x1xf32>
    %265 = arith.divf %263, %264 : vector<16x1xf32>
    %266 = vector.broadcast %265 : vector<16x1xf32> to vector<16x32xf32>
    %267 = arith.subf %261, %266 : vector<16x32xf32>
    %268 = arith.mulf %267, %267 : vector<16x32xf32>
    %cst_64 = arith.constant dense<0.000000e+00> : vector<16xf32>
    %269 = vector.multi_reduction <add>, %268, %cst_64 [1] : vector<16x32xf32> to vector<16xf32>
    %270 = vector.shape_cast %269 : vector<16xf32> to vector<16x1xf32>
    %cst_65 = arith.constant 0.0322580636 : f32
    %271 = vector.broadcast %cst_65 : f32 to vector<16x1xf32>
    %272 = arith.mulf %270, %271 : vector<16x1xf32>
    %273 = math.sqrt %272 : vector<16x1xf32>
    %274 = vector.broadcast %265 : vector<16x1xf32> to vector<16x32xf32>
    %275 = arith.subf %261, %274 : vector<16x32xf32>
    %276 = vector.broadcast %14 : f32 to vector<16x32xf32>
    %277 = arith.mulf %276, %275 : vector<16x32xf32>
    %cst_66 = arith.constant 9.99999997E-7 : f32
    %278 = vector.broadcast %cst_66 : f32 to vector<16x1xf32>
    %279 = arith.addf %273, %278 : vector<16x1xf32>
    %280 = vector.broadcast %279 : vector<16x1xf32> to vector<16x32xf32>
    %281 = arith.divf %277, %280 : vector<16x32xf32>
    %282 = vector.broadcast %15 : f32 to vector<16x32xf32>
    %283 = arith.addf %281, %282 : vector<16x32xf32>
    %cst_67 = arith.constant dense<0.000000e+00> : vector<16x64xf32>
    %284 = tpu.matmul %283, %6, %cst_67 {dimension_numbers = #tpu.dot_dimension_numbers<[1], [0], [0], [1], [0, 0, 1, 1], [], []>} : vector<16x32xf32>, vector<32x64xf32>, vector<16x64xf32> -> vector<16x64xf32>
    %285 = vector.broadcast %7 : vector<1x64xf32> to vector<16x64xf32>
    %286 = arith.addf %284, %285 : vector<16x64xf32>
    %cst_68 = arith.constant 0.000000e+00 : f32
    %287 = vector.broadcast %cst_68 : f32 to vector<16x64xf32>
    %288 = arith.maximumf %286, %287 : vector<16x64xf32>
    %cst_69 = arith.constant dense<0.000000e+00> : vector<16x32xf32>
    %289 = tpu.matmul %288, %8, %cst_69 {dimension_numbers = #tpu.dot_dimension_numbers<[1], [0], [0], [1], [0, 0, 1, 1], [], []>} : vector<16x64xf32>, vector<64x32xf32>, vector<16x32xf32> -> vector<16x32xf32>
    %290 = arith.addf %261, %289 : vector<16x32xf32>
    %291 = vector.broadcast %9 : vector<1x32xf32> to vector<16x32xf32>
    %292 = arith.addf %290, %291 : vector<16x32xf32>
    %c0_70 = arith.constant 0 : index
    %c0_71 = arith.constant 0 : index
    %293 = vector.load %arg5[%c0_70, %c0_71] : memref<16x32xf32, #tpu.memory_space<vmem>>, vector<16x32xf32>
    tpu.vector_store %arg5[%c0_70, %c0_71], %292 {strides = array<i32>} : memref<16x32xf32, #tpu.memory_space<vmem>>, vector<16x32xf32>,
    return
  }
}

</mosaic_0001>

<bundles_post_ra>
// kernel: tpu_custom_call.1
= control target key start
LH: loop header
LB: loop body
LE: loop exit
PB: predicated region body
PF: predicated region fallthrough
CT: control target
= control target key end

     0   :  { %10 = vsyncpa [#allocation4], 0  ;;  %s4857_s0 = inlined_call_operand.vmem [shape: f32[16,32], index: 0, kind: input, shape index: {}]   ;;  %s4858_s1 = inlined_call_operand.vmem [shape: f32[16,32], index: 1, kind: input, shape index: {}]   ;;  %s4859_s2 = inlined_call_operand.vmem [shape: f32[33,256], index: 2, kind: input, shape index: {}]   ;;  %s4860_s3 = inlined_call_operand.vmem [shape: f32[105,64], index: 3, kind: input, shape index: {}]   ;;  %s4861_s4 = inlined_call_operand.vmem [shape: f32[6], index: 4, kind: input, shape index: {}]   ;;  %s4862_s5 = inlined_call_operand.hbm [shape: f32[16,32], index: 5, kind: output, shape index: {}]  }
   0x1   :  { %11 = vsyncpa [#allocation3], 0  ;;  %s26_s20 = sshll.u32 %s4861_s4, 4  ;;  %s27_s20 = int_to_ptr.vmem [resolvable:$true] %s26_s20 }
   0x2   :  { %s4233_s21 = scalar_lea.vmem %s27_s20, 16  ;;  %p4238_p1 = scmp.lt.s32.totalorder %s27_s20, %s27_s20 }
   0x3   :  { %p4234_p0 = scmp.ne.s32.totalorder %s27_s20, %s4233_s21  ;;  %p4239_p2 = scmp.lt.s32.totalorder %s4233_s21, %s4233_s21 }
   0x5   :  { %p4240_p3 = por %p4239_p2, %p4238_p1 }
   0x7   :  { %p4241_p4 = pnand %p4240_p3, %p4234_p0 }
   0x9   :  { %4244 = shalt.err (!%p4241_p4)
}
   0xa   :  { %s4271_s22 = smov [#allocation2]  }
   0xb   :  { %29 = dma.vmem_to_smem %s27_s20, 16, %s4271_s22, [#allocation4]  }
   0xc   :  { %4267 = dma.done.wait [#allocation4], 16  }
   0xd   :  { %4268 = vsyncadd [#allocation4], 4294967280 }
   0xe   :  { %33 = sfence }
   0xf   :  { %v4327_v0 = vld [vmem:[%s4857_s0] sm:$0xff]  ;;  %vm68_vm0 = vcmask 261120   ;;  %v4332_v1 = vld [vmem:[%s4857_s0 + $0x8] sm:$0xff]  ;;  %v4350_v15 = vld [vmem:[%s4859_s2 + $0x10] sm:$0xff]  ;;  %s62_s8 = sld [smem:[#allocation2]]  ;;  %s3606_s9 = sld [smem:[#allocation2 + $0x1]] }
  0x10   :  { %v69_v2 = vsel %vm68_vm0, %v4327_v0, 0.0  ;;  %v72_v3 = vsel %vm68_vm0, %v4332_v1, 0.0  ;;  %v4345_v14 = vld [vmem:[%s4859_s2] sm:$0xff]  ;;  %v4364_v19 = vld [vmem:[%s4859_s2 + $0x30] sm:$0xff]  ;;  %v4272_v47 = vmov 0.0   ;;  %vm4273_vm5 = vmmov 0  }
  0x11   :  { %70 = vadd.xlane.f32.xlu0 %v69_v2  ;;  %v4355_v16 = vld [vmem:[%s4859_s2 + $0x20] sm:$0xff]  ;;  %v4115_v17 = vpack.i.bf16 %v4350_v15, %v4345_v14  ;;  %v4031_v18 = vpack.c.bf16 %v4350_v15, %v4345_v14  ;;  %3807 = vmatprep.subr.mxu0 %v4272_v47  ;;  %s4274_s12 = smov 96   ;;  %vm204_vm6 = vcmask 64512   ;;  %s4275_s13 = smov 64   ;;  %vm1566_vm7 = vcmask 195584  }
  0x12   :  { %v4035_v20 = vpack.c.bf16 %v4364_v19, %v4355_v16  ;;  %3809 = vmatprep.mubr.msk.f32.mxu0 %vm4273_vm5, %v4272_v47  ;;  %v4379_v48 = vld [vmem:[%s4859_s2 + $0x40] ss:$0 sm:$0xff]  ;;  %s4276_s14 = smov 88   ;;  %s4277_s15 = smov 120   ;;  %vm1563_vm8 = vcmask 130048  }
  0x13   :  { %4032 = vmatprep.subr.bf16.mxu1 %v4031_v18  ;;  %s4278_s16 = smov 56   ;;  %s4279_s17 = smov 80  }
  0x14   :  { %4034 = vmatpush3.bf16.msra.mxu1 %v4031_v18  ;;  %s4280_s18 = smov 112   ;;  %s4281_s19 = smov 48  }
  0x15   :  { %73 = vadd.xlane.f32.xlu0 %v72_v3  ;;  %4036 = vmatprep.subr.bf16.mxu1 %v4035_v20  ;;  %v104_v37 = vstv %s62_s8  ;;  %v113_v40 = vstv %s3606_s9  ;;  %s4282_s20 = smov 72   ;;  %s4283_s21 = smov 104  }
  0x16   :  { %s4284_s22 = smov 40   ;;  %s4285_s23 = smov 32  }
  0x17   :  { %s4286_s24 = smov 8   ;;  %s4287_s4 = smov 16  }
  0x18   :  { %4038 = vmatpush3.bf16.msra.mxu1 %v4035_v20  ;;  %s4288_s25 = smov 24   ;;  %s3609_s8 = sld [smem:[#allocation2 + $0x4]] }
  0x19   :  { %3797 = vmatprep.subr.mxu1 %v4272_v47  ;;  %s3610_s9 = sld [smem:[#allocation2 + $0x5]] }
  0x9e   :  { %v71_v4 = vpop.xlane.xlu0 %70 }
  0x9f   :  { %v76_v5 = vmul.f32 0.03125, %v71_v4 }
  0xa1   :  { %v78_v6 = vsub.f32 %v4327_v0, %v76_v5 }
  0xa2   :  { %v74_v7 = vpop.xlane.xlu0 %73 }
  0xa3   :  { %v77_v8 = vmul.f32 0.03125, %v74_v7  ;;  %v80_v9 = vmul.f32 %v78_v6, %v78_v6  ;;  %v105_v38 = vmul.f32 %v104_v37, %v78_v6 }
  0xa5   :  { %v79_v10 = vsub.f32 %v4332_v1, %v77_v8  ;;  %v82_v11 = vsel %vm68_vm0, %v80_v9, 0.0 }
  0xa6   :  { %83 = vadd.xlane.f32.xlu1 %v82_v11 }
  0xa7   :  { %v81_v12 = vmul.f32 %v79_v10, %v79_v10  ;;  %v106_v42 = vmul.f32 %v104_v37, %v79_v10 }
  0xa9   :  { %v85_v13 = vsel %vm68_vm0, %v81_v12, 0.0 }
  0xaa   :  { %86 = vadd.xlane.f32.xlu1 %v85_v13 }
 0x133   :  { %v84_v21 = vpop.xlane.xlu1 %83 }
 0x134   :  { %v88_v22 = vmul.f32 0.032258064, %v84_v21 }
 0x136   :  { %4145 = vrsqrt.f32 %v88_v22  ;;  %vm92_vm1 = vcmp.eq.f32.partialorder %v88_v22, inf  ;;  %v95_v27 = vand.u32 2147483648, %v88_v22  ;;  %vm94_vm2 = vcmp.eq.f32.partialorder %v88_v22, 0.0 }
 0x137   :  { %v87_v23 = vpop.xlane.xlu1 %86 }
 0x138   :  { %v89_v24 = vmul.f32 0.032258064, %v87_v23 }
 0x13a   :  { %4147 = vrsqrt.f32 %v89_v24  ;;  %vm99_vm3 = vcmp.eq.f32.partialorder %v89_v24, inf  ;;  %v102_v33 = vand.u32 2147483648, %v89_v24  ;;  %vm101_vm4 = vcmp.eq.f32.partialorder %v89_v24, 0.0 }
 0x140   :  { %v4146_v25 = vpop.eup %4145 }
 0x141   :  { %v91_v26 = vmul.f32 %v4146_v25, %v88_v22 }
 0x143   :  { %v93_v28 = vsel %vm92_vm1, %v88_v22, %v91_v26 }
 0x144   :  { %v4148_v29 = vpop.eup %4147  ;;  %v96_v30 = vsel %vm94_vm2, %v95_v27, %v93_v28  ;;  %vm3497_vm2 = vcmask 523264  }
 0x145   :  { %v98_v31 = vmul.f32 %v4148_v29, %v89_v24  ;;  %v107_v32 = vadd.f32 1e-06, %v96_v30 }
 0x147   :  { %v100_v34 = vsel %vm99_vm3, %v89_v24, %v98_v31  ;;  %4149 = vrcp.f32 %v107_v32 }
 0x148   :  { %v103_v35 = vsel %vm101_vm4, %v102_v33, %v100_v34 }
 0x149   :  { %v108_v36 = vadd.f32 1e-06, %v103_v35 }
 0x14b   :  { %4151 = vrcp.f32 %v108_v36 }
 0x151   :  { %v4150_v39 = vpop.eup %4149 }
 0x152   :  { %v110_v41 = vmul.f32 %v4150_v39, %v105_v38 }
 0x154   :  { %v114_v43 = vadd.f32 %v113_v40, %v110_v41 }
 0x155   :  { %v4152_v44 = vpop.eup %4151 }
 0x156   :  { %v112_v45 = vmul.f32 %v4152_v44, %v106_v42  ;;  %3794 = vmatprep.mubr.msk.f32.mxu1 %vm68_vm0, %v114_v43 }
 0x158   :  { %v115_v46 = vadd.f32 %v113_v40, %v112_v45 }
 0x15a   :  { %3795 = vmatmul.mubr.msk.f32.vlgmr.msra.gmra.mrb[0].mxu1 %vm68_vm0, %v115_v46 }
 0x15b   :  { %3799 = vmatprep.mubr.msk.f32.mxu1 %vm4273_vm5, %v4272_v47 }
 0x22d   :  { %v3796_v49 = vpop.f32.mrb[0].mxu1 }
 0x22e   :  { %v4382_v50 = vadd.f32 %v3796_v49, %v4379_v48  ;;  %v192_v51 = vpop.f32.mrb[1].mxu1 }
 0x22f   :  { %v4385_v52 = vadd.f32 %v4379_v48, %v192_v51 }
 0x230   :  { %280 = vrot.lane.b32.xlu1 %v4382_v50, %s4274_s12 }
 0x231   :  { %202 = vrot.lane.b32.xlu0 %v4385_v52, %s4274_s12 }
 0x2a2   :  { %v281_v54 = vpop.permute.xlu1 %280 }
 0x2a3   :  { %v203_v53 = vpop.permute.xlu0 %202 }
 0x2a4   :  { %3798 = vmatpush3.xpose.msk.msra.mxu1 %vm204_vm6, %v203_v53 }
 0x2a5   :  { %3802 = vmatprep.subr.mxu1 %v4272_v47 }
 0x2a7   :  { %3800 = vmatmul.mubr.msk.f32.vlgmr.msra.gmra.mrb[2].mxu1 %vm204_vm6, %v4385_v52 }
 0x2a8   :  { %3803 = vmatpush3.xpose.msk.msra.mxu1 %vm204_vm6, %v281_v54  ;;  %3804 = vmatprep.mubr.msk.f32.mxu1 %vm4273_vm5, %v4272_v47 }
 0x2a9   :  { %3812 = vmatprep.subr.mxu1 %v4272_v47 }
 0x2ab   :  { %3805 = vmatmul.mubr.msk.f32.vlgmr.msra.gmra.mrb[4].mxu1 %vm204_vm6, %v4382_v50 }
 0x2ac   :  { %3814 = vmatprep.mubr.msk.f32.mxu1 %vm4273_vm5, %v4272_v47 }
 0x37a   :  { %v275_v55 = vpop.f32.mrb[2].mxu1 }
 0x37b   :  { %v357_v56 = vmul.f32 0.35355338, %v275_v55  ;;  %v3801_v57 = vpop.f32.mrb[3].mxu1 }
 0x37d   :  { %v359_v58 = vfloor.f32 %v357_v56 }
 0x37e   :  { %v352_v59 = vpop.f32.mrb[4].mxu1 }
 0x37f   :  { %v358_v60 = vmul.f32 0.35355338, %v352_v59  ;;  %v3806_v61 = vpop.f32.mrb[5].mxu1  ;;  %v361_v62 = vsel %vm204_vm6, %v359_v58, -inf }
 0x380   :  { %362 = vmax.xlane.f32.xlu1 %v361_v62 }
 0x381   :  { %v360_v63 = vfloor.f32 %v358_v60 }
 0x383   :  { %v364_v2 = vsel %vm204_vm6, %v360_v63, -inf }
 0x384   :  { %365 = vmax.xlane.f32.xlu0 %v364_v2 }
 0x391   :  { %459 = vrot.lane.b32.xlu1 %v4382_v50, %s4275_s13 }
 0x395   :  { %537 = vrot.lane.b32.xlu1 %v4385_v52, %s4276_s14 }
 0x399   :  { %615 = vrot.lane.b32.xlu1 %v4382_v50, %s4276_s14 }
 0x39a   :  { %383 = vrot.lane.b32.xlu0 %v4385_v52, %s4275_s13 }
 0x40d   :  { %v363_v3 = vpop.xlane.xlu1 %362 }
 0x40e   :  { %v367_v4 = vsub.f32 %v359_v58, %v363_v3 }
 0x410   :  { %v369_v5 = vmul.f32 1.442695, %v367_v4 }
 0x411   :  { %v460_v6 = vpop.permute.xlu1 %459  ;;  %v366_v7 = vpop.xlane.xlu0 %365 }
 0x412   :  { %4153 = vpow2.f32 %v369_v5  ;;  %v368_v8 = vsub.f32 %v360_v63, %v366_v7  ;;  %3813 = vmatpush3.msra.mxu1 %v460_v6 }
 0x413   :  { %3822 = vmatprep.subr.mxu1 %v4272_v47 }
 0x414   :  { %v371_v9 = vmul.f32 1.442695, %v368_v8 }
 0x415   :  { %v384_v10 = vpop.permute.xlu0 %383  ;;  %v538_v20 = vpop.permute.xlu1 %537 }
 0x416   :  { %4155 = vpow2.f32 %v371_v9  ;;  %3808 = vmatpush3.msra.mxu0 %v384_v10 }
 0x417   :  { %3817 = vmatprep.subr.mxu0 %v4272_v47 }
 0x419   :  { %v616_v21 = vpop.permute.xlu1 %615 }
 0x41c   :  { %v4154_v11 = vpop.eup %4153 }
 0x41d   :  { %v373_v12 = vsel %vm204_vm6, %v4154_v11, 0.0 }
 0x41e   :  { %374 = vadd.xlane.f32.xlu0 %v373_v12 }
 0x420   :  { %v4156_v13 = vpop.eup %4155 }
 0x421   :  { %v376_v18 = vsel %vm204_vm6, %v4156_v13, 0.0 }
 0x422   :  { %377 = vadd.xlane.f32.xlu1 %v376_v18 }
 0x433   :  { %613 = vrot.lane.b32.xlu1 %v4382_v50, %s4277_s15 }
 0x434   :  { %535 = vrot.lane.b32.xlu0 %v4385_v52, %s4277_s15 }
 0x4ab   :  { %v375_v22 = vpop.xlane.xlu0 %374 }
 0x4ac   :  { %4157 = vrcp.f32 %v375_v22 }
 0x4af   :  { %v378_v23 = vpop.xlane.xlu1 %377  ;;  %v536_v28 = vpop.permute.xlu0 %535 }
 0x4b0   :  { %4159 = vrcp.f32 %v378_v23 }
 0x4b3   :  { %v614_v29 = vpop.permute.xlu1 %613 }
 0x4b6   :  { %v4158_v24 = vpop.eup %4157 }
 0x4b7   :  { %v380_v25 = vmul.f32 %v4158_v24, %v4154_v11 }
 0x4b9   :  { %3810 = vmatmul.mubr.msk.f32.vlgmr.msra.gmra.mrb[0].mxu0 %vm204_vm6, %v380_v25 }
 0x4ba   :  { %v4160_v26 = vpop.eup %4159  ;;  %3818 = vmatpush3.xpose.msk.msra.mxu0 %vm204_vm6, %v538_v20  ;;  %3819 = vmatprep.mubr.msk.f32.mxu0 %vm4273_vm5, %v4272_v47 }
 0x4bb   :  { %v382_v27 = vmul.f32 %v4160_v26, %v4156_v13  ;;  %3827 = vmatprep.subr.mxu0 %v4272_v47 }
 0x4bd   :  { %3815 = vmatmul.mubr.msk.f32.vlgmr.msra.gmra.mrb[6].mxu1 %vm204_vm6, %v382_v27  ;;  %3820 = vmatmul.mubr.msk.f32.vlgmr.msra.gmra.mrb[2].mxu0 %vm204_vm6, %v536_v28 }
 0x4be   :  { %3823 = vmatpush3.xpose.msk.msra.mxu1 %vm204_vm6, %v616_v21  ;;  %3824 = vmatprep.mubr.msk.f32.mxu1 %vm4273_vm5, %v4272_v47 }
 0x4bf   :  { %3832 = vmatprep.subr.mxu1 %v4272_v47  ;;  %3829 = vmatprep.mubr.msk.f32.mxu0 %vm4273_vm5, %v4272_v47 }
 0x4c1   :  { %3825 = vmatmul.mubr.msk.f32.vlgmr.msra.gmra.mrb[8].mxu1 %vm204_vm6, %v614_v29 }
 0x4c2   :  { %3834 = vmatprep.mubr.msk.f32.mxu1 %vm4273_vm5, %v4272_v47 }
 0x58c   :  { %v4435_v30 = vpop.f32.mrb[0].mxu0 }
 0x58d   :  { %v3811_v31 = vpop.f32.mrb[1].mxu0 }
 0x590   :  { %v4437_v32 = vpop.f32.mrb[6].mxu1  ;;  %v609_v33 = vpop.f32.mrb[2].mxu0 }
 0x591   :  { %v691_v34 = vmul.f32 0.35355338, %v609_v33  ;;  %v3816_v35 = vpop.f32.mrb[7].mxu1  ;;  %v3821_v36 = vpop.f32.mrb[3].mxu0 }
 0x593   :  { %v693_v37 = vfloor.f32 %v691_v34 }
 0x594   :  { %v687_v38 = vpop.f32.mrb[8].mxu1 }
 0x595   :  { %v692_v39 = vmul.f32 0.35355338, %v687_v38  ;;  %v3826_v40 = vpop.f32.mrb[9].mxu1  ;;  %v695_v41 = vsel %vm204_vm6, %v693_v37, -inf }
 0x596   :  { %696 = vmax.xlane.f32.xlu0 %v695_v41 }
 0x597   :  { %v694_v42 = vfloor.f32 %v692_v39 }
 0x599   :  { %v698_v43 = vsel %vm204_vm6, %v694_v42, -inf }
 0x59a   :  { %699 = vmax.xlane.f32.xlu1 %v698_v43 }
 0x5ab   :  { %793 = vrot.lane.b32.xlu1 %v4382_v50, %s4278_s16 }
 0x5ac   :  { %717 = vrot.lane.b32.xlu0 %v4385_v52, %s4278_s16  ;;  %s3607_s16 = sld [smem:[#allocation2 + $0x2]] }
 0x5af   :  { %871 = vrot.lane.b32.xlu1 %v4385_v52, %s4279_s17 }
 0x5b3   :  { %949 = vrot.lane.b32.xlu1 %v4382_v50, %s4279_s17 }
 0x5b7   :  { %947 = vrot.lane.b32.xlu1 %v4382_v50, %s4280_s18 }
 0x623   :  { %v697_v44 = vpop.xlane.xlu0 %696 }
 0x624   :  { %v701_v45 = vsub.f32 %v693_v37, %v697_v44 }
 0x626   :  { %v703_v46 = vmul.f32 1.442695, %v701_v45 }
 0x627   :  { %v718_v49 = vpop.permute.xlu0 %717  ;;  %v700_v51 = vpop.xlane.xlu1 %699 }
 0x628   :  { %4161 = vpow2.f32 %v703_v46  ;;  %v702_v53 = vsub.f32 %v694_v42, %v700_v51  ;;  %3828 = vmatpush3.msra.mxu0 %v718_v49 }
 0x629   :  { %3837 = vmatprep.subr.mxu0 %v4272_v47 }
 0x62a   :  { %v705_v54 = vmul.f32 1.442695, %v702_v53 }
 0x62b   :  { %v794_v55 = vpop.permute.xlu1 %793 }
 0x62c   :  { %4163 = vpow2.f32 %v705_v54  ;;  %3833 = vmatpush3.msra.mxu1 %v794_v55 }
 0x62d   :  { %3842 = vmatprep.subr.mxu1 %v4272_v47 }
 0x62f   :  { %v872_v62 = vpop.permute.xlu1 %871 }
 0x632   :  { %v4162_v56 = vpop.eup %4161 }
 0x633   :  { %v707_v57 = vsel %vm204_vm6, %v4162_v56, 0.0  ;;  %v950_v4 = vpop.permute.xlu1 %949 }
 0x634   :  { %708 = vadd.xlane.f32.xlu0 %v707_v57 }
 0x636   :  { %v4164_v58 = vpop.eup %4163 }
 0x637   :  { %v710_v59 = vsel %vm204_vm6, %v4164_v58, 0.0  ;;  %v948_v7 = vpop.permute.xlu1 %947 }
 0x638   :  { %711 = vadd.xlane.f32.xlu0 %v710_v59 }
 0x64e   :  { %869 = vrot.lane.b32.xlu0 %v4385_v52, %s4280_s18 }
 0x6c1   :  { %v709_v60 = vpop.xlane.xlu0 %708 }
 0x6c2   :  { %4165 = vrcp.f32 %v709_v60 }
 0x6c5   :  { %v712_v61 = vpop.xlane.xlu0 %711 }
 0x6c6   :  { %4167 = vrcp.f32 %v712_v61 }
 0x6c9   :  { %v870_v6 = vpop.permute.xlu0 %869 }
 0x6cc   :  { %v4166_v63 = vpop.eup %4165 }
 0x6cd   :  { %v714_v2 = vmul.f32 %v4166_v63, %v4162_v56 }
 0x6cf   :  { %3830 = vmatmul.mubr.msk.f32.vlgmr.msra.gmra.mrb[4].mxu0 %vm204_vm6, %v714_v2 }
 0x6d0   :  { %v4168_v3 = vpop.eup %4167  ;;  %3838 = vmatpush3.xpose.msk.msra.mxu0 %vm204_vm6, %v872_v62  ;;  %3839 = vmatprep.mubr.msk.f32.mxu0 %vm4273_vm5, %v4272_v47 }
 0x6d1   :  { %v716_v5 = vmul.f32 %v4168_v3, %v4164_v58  ;;  %3847 = vmatprep.subr.mxu0 %v4272_v47 }
 0x6d3   :  { %3835 = vmatmul.mubr.msk.f32.vlgmr.msra.gmra.mrb[10].mxu1 %vm204_vm6, %v716_v5  ;;  %3840 = vmatmul.mubr.msk.f32.vlgmr.msra.gmra.mrb[6].mxu0 %vm204_vm6, %v870_v6 }
 0x6d4   :  { %3843 = vmatpush3.xpose.msk.msra.mxu1 %vm204_vm6, %v950_v4  ;;  %3844 = vmatprep.mubr.msk.f32.mxu1 %vm4273_vm5, %v4272_v47 }
 0x6d5   :  { %3852 = vmatprep.subr.mxu1 %v4272_v47  ;;  %3849 = vmatprep.mubr.msk.f32.mxu0 %vm4273_vm5, %v4272_v47 }
 0x6d7   :  { %3845 = vmatmul.mubr.msk.f32.vlgmr.msra.gmra.mrb[12].mxu1 %vm204_vm6, %v948_v7  ;;  %v4120_v7 = vpack.i.bf16 %v4364_v19, %v4355_v16 }
 0x6d8   :  { %3854 = vmatprep.mubr.msk.f32.mxu1 %vm4273_vm5, %v4272_v47 }
 0x7a2   :  { %v4471_v8 = vpop.f32.mrb[4].mxu0 }
 0x7a3   :  { %v3831_v9 = vpop.f32.mrb[5].mxu0 }
 0x7a6   :  { %v4473_v10 = vpop.f32.mrb[10].mxu1  ;;  %v943_v11 = vpop.f32.mrb[6].mxu0 }
 0x7a7   :  { %v1025_v12 = vmul.f32 0.35355338, %v943_v11  ;;  %v3836_v13 = vpop.f32.mrb[11].mxu1  ;;  %v3841_v18 = vpop.f32.mrb[7].mxu0 }
 0x7a9   :  { %v1027_v20 = vfloor.f32 %v1025_v12 }
 0x7aa   :  { %v1021_v21 = vpop.f32.mrb[12].mxu1 }
 0x7ab   :  { %v1026_v22 = vmul.f32 0.35355338, %v1021_v21  ;;  %v3846_v23 = vpop.f32.mrb[13].mxu1  ;;  %v1029_v24 = vsel %vm204_vm6, %v1027_v20, -inf }
 0x7ac   :  { %1030 = vmax.xlane.f32.xlu0 %v1029_v24 }
 0x7ad   :  { %v1028_v25 = vfloor.f32 %v1026_v22 }
 0x7af   :  { %v1032_v26 = vsel %vm204_vm6, %v1028_v25, -inf }
 0x7b0   :  { %1033 = vmax.xlane.f32.xlu1 %v1032_v26 }
 0x7c1   :  { %1127 = vrot.lane.b32.xlu1 %v4382_v50, %s4281_s19 }
 0x7c2   :  { %1051 = vrot.lane.b32.xlu0 %v4385_v52, %s4281_s19 }
 0x7c5   :  { %1205 = vrot.lane.b32.xlu1 %v4385_v52, %s4282_s20 }
 0x7c9   :  { %1283 = vrot.lane.b32.xlu1 %v4382_v50, %s4282_s20 }
 0x7cd   :  { %1281 = vrot.lane.b32.xlu1 %v4382_v50, %s4283_s21 }
 0x839   :  { %v1031_v27 = vpop.xlane.xlu0 %1030 }
 0x83a   :  { %v1035_v28 = vsub.f32 %v1027_v20, %v1031_v27 }
 0x83c   :  { %v1037_v29 = vmul.f32 1.442695, %v1035_v28 }
 0x83d   :  { %v1052_v31 = vpop.permute.xlu0 %1051  ;;  %v1034_v33 = vpop.xlane.xlu1 %1033 }
 0x83e   :  { %4169 = vpow2.f32 %v1037_v29  ;;  %v1036_v34 = vsub.f32 %v1028_v25, %v1034_v33  ;;  %3848 = vmatpush3.msra.mxu0 %v1052_v31 }
 0x83f   :  { %3857 = vmatprep.subr.mxu0 %v4272_v47 }
 0x840   :  { %v1039_v35 = vmul.f32 1.442695, %v1036_v34 }
 0x841   :  { %v1128_v36 = vpop.permute.xlu1 %1127 }
 0x842   :  { %4171 = vpow2.f32 %v1039_v35  ;;  %3853 = vmatpush3.msra.mxu1 %v1128_v36 }
 0x843   :  { %3862 = vmatprep.subr.mxu1 %v4272_v47 }
 0x845   :  { %v1206_v43 = vpop.permute.xlu1 %1205 }
 0x848   :  { %v4170_v37 = vpop.eup %4169 }
 0x849   :  { %v1041_v38 = vsel %vm204_vm6, %v4170_v37, 0.0  ;;  %v1284_v49 = vpop.permute.xlu1 %1283 }
 0x84a   :  { %1042 = vadd.xlane.f32.xlu0 %v1041_v38 }
 0x84c   :  { %v4172_v39 = vpop.eup %4171 }
 0x84d   :  { %v1044_v40 = vsel %vm204_vm6, %v4172_v39, 0.0  ;;  %v1282_v54 = vpop.permute.xlu1 %1281 }
 0x84e   :  { %1045 = vadd.xlane.f32.xlu0 %v1044_v40 }
 0x864   :  { %1203 = vrot.lane.b32.xlu0 %v4385_v52, %s4283_s21 }
 0x8d7   :  { %v1043_v41 = vpop.xlane.xlu0 %1042 }
 0x8d8   :  { %4173 = vrcp.f32 %v1043_v41 }
 0x8db   :  { %v1046_v42 = vpop.xlane.xlu0 %1045 }
 0x8dc   :  { %4175 = vrcp.f32 %v1046_v42 }
 0x8df   :  { %v1204_v53 = vpop.permute.xlu0 %1203 }
 0x8e2   :  { %v4174_v44 = vpop.eup %4173 }
 0x8e3   :  { %v1048_v45 = vmul.f32 %v4174_v44, %v4170_v37 }
 0x8e5   :  { %3850 = vmatmul.mubr.msk.f32.vlgmr.msra.gmra.mrb[8].mxu0 %vm204_vm6, %v1048_v45 }
 0x8e6   :  { %v4176_v46 = vpop.eup %4175  ;;  %3858 = vmatpush3.xpose.msk.msra.mxu0 %vm204_vm6, %v1206_v43  ;;  %3859 = vmatprep.mubr.msk.f32.mxu0 %vm4273_vm5, %v4272_v47 }
 0x8e7   :  { %v1050_v51 = vmul.f32 %v4176_v46, %v4172_v39  ;;  %3867 = vmatprep.subr.mxu0 %v4272_v47 }
 0x8e9   :  { %3855 = vmatmul.mubr.msk.f32.vlgmr.msra.gmra.mrb[14].mxu1 %vm204_vm6, %v1050_v51  ;;  %3860 = vmatmul.mubr.msk.f32.vlgmr.msra.gmra.mrb[10].mxu0 %vm204_vm6, %v1204_v53 }
 0x8ea   :  { %3863 = vmatpush3.xpose.msk.msra.mxu1 %vm204_vm6, %v1284_v49  ;;  %3864 = vmatprep.mubr.msk.f32.mxu1 %vm4273_vm5, %v4272_v47 }
 0x8eb   :  { %3872 = vmatprep.subr.mxu1 %v4272_v47  ;;  %3869 = vmatprep.mubr.msk.f32.mxu0 %vm4273_vm5, %v4272_v47 }
 0x8ed   :  { %3865 = vmatmul.mubr.msk.f32.vlgmr.msra.gmra.mrb[16].mxu1 %vm204_vm6, %v1282_v54 }
 0x8ee   :  { %3874 = vmatprep.mubr.msk.f32.mxu1 %vm4273_vm5, %v4272_v47 }
 0x9b8   :  { %v1123_v55 = vpop.f32.mrb[8].mxu0 }
 0x9b9   :  { %v3851_v56 = vpop.f32.mrb[9].mxu0 }
 0x9bc   :  { %v1199_v57 = vpop.f32.mrb[14].mxu1  ;;  %v1277_v58 = vpop.f32.mrb[10].mxu0 }
 0x9bd   :  { %v1359_v59 = vmul.f32 0.35355338, %v1277_v58  ;;  %v3856_v60 = vpop.f32.mrb[15].mxu1  ;;  %v3861_v61 = vpop.f32.mrb[11].mxu0 }
 0x9be   :  { %v39_v60 = vld [vmem:[%s4859_s2 + $0x8] sm:$0xff] }
 0x9bf   :  { %v1361_v62 = vfloor.f32 %v1359_v59 }
 0x9c0   :  { %v1355_v63 = vpop.f32.mrb[16].mxu1 }
 0x9c1   :  { %v1360_v2 = vmul.f32 0.35355338, %v1355_v63  ;;  %v3866_v3 = vpop.f32.mrb[17].mxu1  ;;  %v1363_v4 = vsel %vm204_vm6, %v1361_v62, -inf }
 0x9c2   :  { %1364 = vmax.xlane.f32.xlu0 %v1363_v4 }
 0x9c3   :  { %v1362_v5 = vfloor.f32 %v1360_v2 }
 0x9c5   :  { %v1366_v6 = vsel %vm204_vm6, %v1362_v5, -inf }
 0x9c6   :  { %1367 = vmax.xlane.f32.xlu1 %v1366_v6 }
 0x9d7   :  { %1461 = vrot.lane.b32.xlu1 %v4382_v50, %s4284_s22 }
 0x9db   :  { %4116 = vrot.lane.b32.xlu1 %v4115_v17, %s4285_s23 }
 0x9df   :  { %4121 = vrot.lane.b32.xlu1 %v4120_v7, %s4285_s23 }
 0x9e3   :  { %1541 = vrot.lane.b32.xlu1 %v4473_v10, %s4286_s24 }
 0x9e7   :  { %1549 = vrot.lane.b32.xlu1 %v1199_v57, %s4287_s4 }
 0xa4f   :  { %v1365_v9 = vpop.xlane.xlu0 %1364 }
 0xa50   :  { %v1369_v50 = vsub.f32 %v1361_v62, %v1365_v9 }
 0xa52   :  { %v1371_v11 = vmul.f32 1.442695, %v1369_v50  ;;  %v43_v50 = vld [vmem:[%s4859_s2 + $0x28] sm:$0xff] }
 0xa53   :  { %v1368_v12 = vpop.xlane.xlu1 %1367 }
 0xa54   :  { %4177 = vpow2.f32 %v1371_v11  ;;  %v1370_v13 = vsub.f32 %v1362_v5, %v1368_v12  ;;  %v45_v11 = vld [vmem:[%s4859_s2 + $0x38] sm:$0xff] }
 0xa55   :  { %v4580_v12 = vpack.i.bf16 %v45_v11, %v43_v50 }
 0xa56   :  { %v1373_v14 = vmul.f32 1.442695, %v1370_v13 }
 0xa57   :  { %v1462_v15 = vpop.permute.xlu1 %1461 }
 0xa58   :  { %4179 = vpow2.f32 %v1373_v14  ;;  %3873 = vmatpush3.msra.mxu1 %v1462_v15 }
 0xa5b   :  { %v4117_v20 = vpop.permute.xlu1 %4116 }
 0xa5c   :  { %v4119_v21 = vunpack.i.h.bf16 %v4117_v20  ;;  %v4118_v22 = vunpack.i.l.bf16 %v4117_v20 }
 0xa5e   :  { %v4178_v16 = vpop.eup %4177  ;;  %v4039_v24 = vpack.c.bf16 %v4119_v21, %v4118_v22 }
 0xa5f   :  { %v1375_v17 = vsel %vm204_vm6, %v4178_v16, 0.0  ;;  %v4122_v25 = vpop.permute.xlu1 %4121 }
 0xa60   :  { %1376 = vadd.xlane.f32.xlu0 %v1375_v17  ;;  %v4124_v26 = vunpack.i.h.bf16 %v4122_v25  ;;  %v4123_v27 = vunpack.i.l.bf16 %v4122_v25  ;;  %v36_v17 = vld [vmem:[%s4858_s1] sm:$0xff] }
 0xa62   :  { %v4180_v19 = vpop.eup %4179  ;;  %v4043_v29 = vpack.c.bf16 %v4124_v26, %v4123_v27 }
 0xa63   :  { %v1378_v10 = vsel %vm204_vm6, %v4180_v19, 0.0  ;;  %v1542_v39 = vpop.permute.xlu1 %1541 }
 0xa64   :  { %1379 = vadd.xlane.f32.xlu0 %v1378_v10  ;;  %v1562_v46 = vsel %vm204_vm6, %v4437_v32, %v1542_v39 }
 0xa67   :  { %v1550_v42 = vpop.permute.xlu1 %1549 }
 0xa7a   :  { %1385 = vrot.lane.b32.xlu0 %v4385_v52, %s4284_s22 }
 0xa7e   :  { %1539 = vrot.lane.b32.xlu0 %v4471_v8, %s4286_s24 }
 0xa82   :  { %1547 = vrot.lane.b32.xlu0 %v1123_v55, %s4287_s4 }
 0xaed   :  { %v1377_v18 = vpop.xlane.xlu0 %1376 }
 0xaee   :  { %4181 = vrcp.f32 %v1377_v18  ;;  %v4592_v18 = vld [vmem:[%s4859_s2 + $0x48] ss:$0 sm:$0xff] }
 0xaf1   :  { %v1380_v23 = vpop.xlane.xlu0 %1379 }
 0xaf2   :  { %4183 = vrcp.f32 %v1380_v23 }
 0xaf5   :  { %v1386_v28 = vpop.permute.xlu0 %1385 }
 0xaf6   :  { %3868 = vmatpush3.msra.mxu0 %v1386_v28 }
 0xaf7   :  { %4040 = vmatprep.subr.bf16.mxu0 %v4039_v24 }
 0xaf8   :  { %v4182_v52 = vpop.eup %4181 }
 0xaf9   :  { %v1382_v31 = vmul.f32 %v4182_v52, %v4178_v16  ;;  %v1540_v38 = vpop.permute.xlu0 %1539 }
 0xafa   :  { %v1561_v41 = vsel %vm204_vm6, %v4435_v30, %v1540_v38 }
 0xafb   :  { %3870 = vmatmul.mubr.msk.f32.vlgmr.msra.gmra.mrb[12].mxu0 %vm204_vm6, %v1382_v31 }
 0xafc   :  { %v4184_v8 = vpop.eup %4183  ;;  %4042 = vmatpush3.bf16.msra.mxu0 %v4039_v24 }
 0xafd   :  { %v1384_v33 = vmul.f32 %v4184_v8, %v4180_v19  ;;  %4044 = vmatprep.subr.bf16.mxu0 %v4043_v29  ;;  %v1548_v40 = vpop.permute.xlu0 %1547  ;;  %v4051_v19 = vpack.c.bf16 %v45_v11, %v43_v50 }
 0xafe   :  { %v1564_v43 = vsel %vm1563_vm8, %v1561_v41, %v1548_v40  ;;  %v1706_v41 = vstv %s3607_s16 }
 0xaff   :  { %3875 = vmatmul.mubr.msk.f32.vlgmr.msra.gmra.mrb[18].mxu1 %vm204_vm6, %v1384_v33 }
 0xb00   :  { %4046 = vmatpush3.bf16.msra.mxu0 %v4043_v29  ;;  %v37_v29 = vld [vmem:[%s4858_s1 + $0x8] sm:$0xff]  ;;  %s3608_s1 = sld [smem:[#allocation2 + $0x3]] }
 0xbce   :  { %v1457_v34 = vpop.f32.mrb[12].mxu0 }
 0xbcf   :  { %1555 = vrot.lane.b32.xlu0 %v1457_v34, %s4288_s25  ;;  %v3871_v35 = vpop.f32.mrb[13].mxu0 }
 0xbd2   :  { %v1533_v36 = vpop.f32.mrb[18].mxu1 }
 0xbd3   :  { %1557 = vrot.lane.b32.xlu1 %v1533_v36, %s4288_s25  ;;  %v3876_v37 = vpop.f32.mrb[19].mxu1  ;;  %1586 = vrot.lane.b32.xlu0 %v4379_v48, %s4285_s23  ;;  %v1565_v48 = vsel %vm1563_vm8, %v1562_v46, %v1550_v42 }
 0xc41   :  { %v1556_v44 = vpop.permute.xlu0 %1555 }
 0xc42   :  { %v1567_v45 = vsel %vm1566_vm7, %v1564_v43, %v1556_v44  ;;  %v1715_v44 = vstv %s3608_s1 }
 0xc43   :  { %3885 = vmatprep.mubr.msk.f32.mxu0 %vm68_vm0, %v1567_v45 }
 0xc45   :  { %v1558_v49 = vpop.permute.xlu1 %1557  ;;  %v1587_v53 = vpop.permute.xlu0 %1586 }
 0xc46   :  { %v1568_v51 = vsel %vm1566_vm7, %v1565_v48, %v1558_v49 }
 0xc47   :  { %3886 = vmatmul.mubr.msk.f32.vlgmr.msra.gmra.mrb[14].mxu0 %vm68_vm0, %v1568_v51 }
 0xc48   :  { %3907 = vmatprep.mubr.msk.f32.mxu0 %vm68_vm0, %v36_v17 }
 0xd1a   :  { %v3887_v30 = vpop.f32.mrb[14].mxu0 }
 0xd1b   :  { %v1667_v54 = vadd.f32 %v3887_v30, %v1587_v53  ;;  %v1661_v55 = vpop.f32.mrb[15].mxu0 }
 0xd1c   :  { %v1662_v56 = vadd.f32 %v1661_v55, %v1587_v53 }
 0xd1d   :  { %v4543_v57 = vadd.f32 %v1667_v54, %v4332_v1  ;;  %v41_v1 = vld [vmem:[%s4859_s2 + $0x18] sm:$0xff] }
 0xd1e   :  { %v4546_v58 = vadd.f32 %v1662_v56, %v4327_v0  ;;  %v4558_v61 = vpack.i.bf16 %v41_v1, %v39_v60  ;;  %v4047_v16 = vpack.c.bf16 %v41_v1, %v39_v60 }
 0xd1f   :  { %v1675_v32 = vsel %vm68_vm0, %v4543_v57, 0.0 }
 0xd20   :  { %1676 = vadd.xlane.f32.xlu0 %v1675_v32  ;;  %v1672_v59 = vsel %vm68_vm0, %v4546_v58, 0.0  ;;  %4048 = vmatprep.subr.bf16.mxu1 %v4047_v16 }
 0xd21   :  { %1673 = vadd.xlane.f32.xlu1 %v1672_v59  ;;  %4050 = vmatpush3.bf16.msra.mxu1 %v4047_v16 }
 0xd22   :  { %4052 = vmatprep.subr.bf16.mxu1 %v4051_v19 }
 0xd25   :  { %4054 = vmatpush3.bf16.msra.mxu1 %v4051_v19 }
 0xd26   :  { %3910 = vmatprep.subr.mxu1 %v4272_v47 }
 0xd32   :  { %4126 = vrot.lane.b32.xlu1 %v4558_v61, %s4274_s12 }
 0xd36   :  { %1820 = vrot.lane.b32.xlu1 %v4592_v18, %s4274_s12 }
 0xdad   :  { %v1677_v0 = vpop.xlane.xlu0 %1676 }
 0xdae   :  { %v1679_v62 = vmul.f32 0.03125, %v1677_v0  ;;  %v1674_v63 = vpop.xlane.xlu1 %1673 }
 0xdaf   :  { %v1678_v2 = vmul.f32 0.03125, %v1674_v63 }
 0xdb0   :  { %v4563_v3 = vsub.f32 %v4543_v57, %v1679_v62 }
 0xdb1   :  { %v4566_v4 = vsub.f32 %v4546_v58, %v1678_v2 }
 0xdb2   :  { %v1683_v7 = vmul.f32 %v4563_v3, %v4563_v3  ;;  %v4127_v13 = vpop.permute.xlu1 %4126  ;;  %v1708_v46 = vmul.f32 %v1706_v41, %v4563_v3 }
 0xdb3   :  { %v1682_v5 = vmul.f32 %v4566_v4, %v4566_v4  ;;  %v4129_v14 = vunpack.i.h.bf16 %v4127_v13  ;;  %v4128_v15 = vunpack.i.l.bf16 %v4127_v13  ;;  %v1707_v42 = vmul.f32 %v1706_v41, %v4566_v4 }
 0xdb4   :  { %v1687_v9 = vsel %vm68_vm0, %v1683_v7, 0.0 }
 0xdb5   :  { %v1684_v6 = vsel %vm68_vm0, %v1682_v5, 0.0  ;;  %v4055_v10 = vpack.c.bf16 %v4129_v14, %v4128_v15 }
 0xdb6   :  { %1685 = vadd.xlane.f32.xlu0 %v1684_v6  ;;  %v1821_v30 = vpop.permute.xlu1 %1820 }
 0xdb7   :  { %4056 = vmatprep.subr.bf16.mxu0 %v4055_v10 }
 0xdb8   :  { %4058 = vmatpush3.bf16.msra.mxu0 %v4055_v10 }
 0xdba   :  { %1688 = vadd.xlane.f32.xlu0 %v1687_v9 }
 0xdd0   :  { %4131 = vrot.lane.b32.xlu0 %v4580_v12, %s4274_s12 }
 0xe43   :  { %v1686_v20 = vpop.xlane.xlu0 %1685 }
 0xe44   :  { %v1690_v21 = vmul.f32 0.032258064, %v1686_v20 }
 0xe46   :  { %4185 = vrsqrt.f32 %v1690_v21  ;;  %vm1694_vm9 = vcmp.eq.f32.partialorder %v1690_v21, inf  ;;  %v1697_v31 = vand.u32 2147483648, %v1690_v21  ;;  %vm1696_vm10 = vcmp.eq.f32.partialorder %v1690_v21, 0.0 }
 0xe47   :  { %v1689_v22 = vpop.xlane.xlu0 %1688 }
 0xe48   :  { %v1691_v23 = vmul.f32 0.032258064, %v1689_v22 }
 0xe4a   :  { %4187 = vrsqrt.f32 %v1691_v23  ;;  %vm1701_vm11 = vcmp.eq.f32.partialorder %v1691_v23, inf  ;;  %v1704_v37 = vand.u32 2147483648, %v1691_v23  ;;  %vm1703_vm12 = vcmp.eq.f32.partialorder %v1691_v23, 0.0 }
 0xe4b   :  { %v4132_v24 = vpop.permute.xlu0 %4131 }
 0xe4c   :  { %v4134_v25 = vunpack.i.h.bf16 %v4132_v24  ;;  %v4133_v26 = vunpack.i.l.bf16 %v4132_v24 }
 0xe4e   :  { %v4059_v27 = vpack.c.bf16 %v4134_v25, %v4133_v26 }
 0xe50   :  { %v4186_v28 = vpop.eup %4185  ;;  %4060 = vmatprep.subr.bf16.mxu0 %v4059_v27 }
 0xe51   :  { %v1693_v52 = vmul.f32 %v4186_v28, %v1690_v21  ;;  %4062 = vmatpush3.bf16.msra.mxu0 %v4059_v27 }
 0xe52   :  { %3920 = vmatprep.subr.mxu0 %v4272_v47 }
 0xe53   :  { %v1695_v8 = vsel %vm1694_vm9, %v1690_v21, %v1693_v52 }
 0xe54   :  { %v4188_v33 = vpop.eup %4187  ;;  %v1698_v34 = vsel %vm1696_vm10, %v1697_v31, %v1695_v8  ;;  %3908 = vmatmul.mubr.msk.f32.vlgmr.msra.gmra.mrb[16].mxu0 %vm68_vm0, %v37_v29 }
 0xe55   :  { %v1700_v35 = vmul.f32 %v4188_v33, %v1691_v23  ;;  %v1709_v36 = vadd.f32 1e-06, %v1698_v34  ;;  %3922 = vmatprep.mubr.msk.f32.mxu0 %vm4273_vm5, %v4272_v47 }
 0xe57   :  { %v1702_v38 = vsel %vm1701_vm11, %v1691_v23, %v1700_v35  ;;  %4189 = vrcp.f32 %v1709_v36 }
 0xe58   :  { %v1705_v39 = vsel %vm1703_vm12, %v1704_v37, %v1702_v38 }
 0xe59   :  { %v1710_v40 = vadd.f32 1e-06, %v1705_v39 }
 0xe5b   :  { %4191 = vrcp.f32 %v1710_v40 }
 0xe61   :  { %v4190_v43 = vpop.eup %4189 }
 0xe62   :  { %v1712_v45 = vmul.f32 %v4190_v43, %v1707_v42 }
 0xe64   :  { %v1716_v48 = vadd.f32 %v1715_v44, %v1712_v45 }
 0xe65   :  { %v4192_v49 = vpop.eup %4191 }
 0xe66   :  { %v1714_v51 = vmul.f32 %v4192_v49, %v1708_v46  ;;  %3896 = vmatprep.mubr.msk.f32.mxu1 %vm68_vm0, %v1716_v48 }
 0xe68   :  { %v1717_v53 = vadd.f32 %v1715_v44, %v1714_v51 }
 0xe6a   :  { %3897 = vmatmul.mubr.msk.f32.vlgmr.msra.gmra.mrb[20].mxu1 %vm68_vm0, %v1717_v53 }
 0xe6b   :  { %3912 = vmatprep.mubr.msk.f32.mxu1 %vm4273_vm5, %v4272_v47 }
 0xf27   :  { %v3909_v54 = vpop.f32.mrb[16].mxu0 }
 0xf28   :  { %v1895_v55 = vpop.f32.mrb[17].mxu0  ;;  %v4617_v1 = vadd.f32 %v3909_v54, %v1821_v30 }
 0xf29   :  { %v4609_v56 = vadd.f32 %v1895_v55, %v1821_v30 }
 0xf2b   :  { %3911 = vmatpush3.xpose.msk.msra.mxu1 %vm204_vm6, %v4609_v56 }
 0xf2c   :  { %3915 = vmatprep.subr.mxu1 %v4272_v47 }
 0xf3d   :  { %v3898_v32 = vpop.f32.mrb[20].mxu1 }
 0xf3e   :  { %v1794_v59 = vpop.f32.mrb[21].mxu1  ;;  %v4626_v0 = vadd.f32 %v3898_v32, %v4592_v18 }
 0xf3f   :  { %v4615_v60 = vadd.f32 %v4592_v18, %v1794_v59 }
 0xf41   :  { %3913 = vmatmul.mubr.msk.f32.vlgmr.msra.gmra.mrb[22].mxu1 %vm204_vm6, %v4615_v60 }
 0xf42   :  { %3916 = vmatpush3.xpose.msk.msra.mxu1 %vm204_vm6, %v4617_v1  ;;  %3917 = vmatprep.mubr.msk.f32.mxu1 %vm4273_vm5, %v4272_v47 }
 0xf43   :  { %3925 = vmatprep.subr.mxu1 %v4272_v47 }
 0xf45   :  { %3918 = vmatmul.mubr.msk.f32.vlgmr.msra.gmra.mrb[24].mxu1 %vm204_vm6, %v4626_v0 }
 0xf46   :  { %3927 = vmatprep.mubr.msk.f32.mxu1 %vm4273_vm5, %v4272_v47 }
0x1014   :  { %v1976_v62 = vpop.f32.mrb[22].mxu1 }
0x1015   :  { %v2056_v63 = vmul.f32 0.35355338, %v1976_v62  ;;  %v3914_v2 = vpop.f32.mrb[23].mxu1 }
0x1017   :  { %v2058_v3 = vfloor.f32 %v2056_v63 }
0x1018   :  { %v2052_v4 = vpop.f32.mrb[24].mxu1 }
0x1019   :  { %v2057_v5 = vmul.f32 0.35355338, %v2052_v4  ;;  %v3919_v6 = vpop.f32.mrb[25].mxu1  ;;  %v2060_v7 = vsel %vm204_vm6, %v2058_v3, -inf }
0x101a   :  { %2061 = vmax.xlane.f32.xlu1 %v2060_v7 }
0x101b   :  { %v2059_v9 = vfloor.f32 %v2057_v5 }
0x101d   :  { %v2063_v50 = vsel %vm204_vm6, %v2059_v9, -inf }
0x101e   :  { %2064 = vmax.xlane.f32.xlu0 %v2063_v50 }
0x102b   :  { %2158 = vrot.lane.b32.xlu1 %v4617_v1, %s4274_s12 }
0x102f   :  { %2236 = vrot.lane.b32.xlu1 %v4609_v56, %s4277_s15 }
0x1033   :  { %2314 = vrot.lane.b32.xlu1 %v4617_v1, %s4277_s15 }
0x1034   :  { %2082 = vrot.lane.b32.xlu0 %v4609_v56, %s4274_s12 }
0x10a7   :  { %v2062_v11 = vpop.xlane.xlu1 %2061 }
0x10a8   :  { %v2066_v13 = vsub.f32 %v2058_v3, %v2062_v11 }
0x10aa   :  { %v2068_v14 = vmul.f32 1.442695, %v2066_v13 }
0x10ab   :  { %v2159_v15 = vpop.permute.xlu1 %2158  ;;  %v2065_v16 = vpop.xlane.xlu0 %2064 }
0x10ac   :  { %4193 = vpow2.f32 %v2068_v14  ;;  %v2067_v17 = vsub.f32 %v2059_v9, %v2065_v16  ;;  %3926 = vmatpush3.msra.mxu1 %v2159_v15 }
0x10ad   :  { %3935 = vmatprep.subr.mxu1 %v4272_v47 }
0x10ae   :  { %v2070_v19 = vmul.f32 1.442695, %v2067_v17 }
0x10af   :  { %v2083_v10 = vpop.permute.xlu0 %2082  ;;  %v2237_v24 = vpop.permute.xlu1 %2236 }
0x10b0   :  { %4195 = vpow2.f32 %v2070_v19  ;;  %3921 = vmatpush3.msra.mxu0 %v2083_v10 }
0x10b1   :  { %3930 = vmatprep.subr.mxu0 %v4272_v47 }
0x10b3   :  { %v2315_v25 = vpop.permute.xlu1 %2314 }
0x10b6   :  { %v4194_v20 = vpop.eup %4193 }
0x10b7   :  { %v2072_v21 = vsel %vm204_vm6, %v4194_v20, 0.0 }
0x10b8   :  { %2073 = vadd.xlane.f32.xlu0 %v2072_v21 }
0x10ba   :  { %v4196_v22 = vpop.eup %4195 }
0x10bb   :  { %v2075_v23 = vsel %vm204_vm6, %v4196_v22, 0.0 }
0x10bc   :  { %2076 = vadd.xlane.f32.xlu1 %v2075_v23 }
0x10cd   :  { %2312 = vrot.lane.b32.xlu1 %v4626_v0, %s4277_s15 }
0x10ce   :  { %2234 = vrot.lane.b32.xlu0 %v4615_v60, %s4277_s15  ;;  %s4289_s15 = smov [#allocation5]  }
0x1145   :  { %v2074_v26 = vpop.xlane.xlu0 %2073 }
0x1146   :  { %4197 = vrcp.f32 %v2074_v26 }
0x1149   :  { %v2077_v27 = vpop.xlane.xlu1 %2076  ;;  %v2235_v8 = vpop.permute.xlu0 %2234 }
0x114a   :  { %4199 = vrcp.f32 %v2077_v27 }
0x114d   :  { %v2313_v33 = vpop.permute.xlu1 %2312 }
0x1150   :  { %v4198_v28 = vpop.eup %4197 }
0x1151   :  { %v2079_v52 = vmul.f32 %v4198_v28, %v4194_v20 }
0x1153   :  { %3923 = vmatmul.mubr.msk.f32.vlgmr.msra.gmra.mrb[18].mxu0 %vm204_vm6, %v2079_v52 }
0x1154   :  { %v4200_v29 = vpop.eup %4199  ;;  %3931 = vmatpush3.xpose.msk.msra.mxu0 %vm204_vm6, %v2237_v24  ;;  %3932 = vmatprep.mubr.msk.f32.mxu0 %vm4273_vm5, %v4272_v47 }
0x1155   :  { %v2081_v31 = vmul.f32 %v4200_v29, %v4196_v22  ;;  %3940 = vmatprep.subr.mxu0 %v4272_v47 }
0x1157   :  { %3928 = vmatmul.mubr.msk.f32.vlgmr.msra.gmra.mrb[26].mxu1 %vm204_vm6, %v2081_v31  ;;  %3933 = vmatmul.mubr.msk.f32.vlgmr.msra.gmra.mrb[20].mxu0 %vm204_vm6, %v2235_v8 }
0x1158   :  { %3936 = vmatpush3.xpose.msk.msra.mxu1 %vm204_vm6, %v2315_v25  ;;  %3937 = vmatprep.mubr.msk.f32.mxu1 %vm4273_vm5, %v4272_v47 }
0x1159   :  { %3945 = vmatprep.subr.mxu1 %v4272_v47  ;;  %3942 = vmatprep.mubr.msk.f32.mxu0 %vm4273_vm5, %v4272_v47 }
0x115b   :  { %3938 = vmatmul.mubr.msk.f32.vlgmr.msra.gmra.mrb[28].mxu1 %vm204_vm6, %v2313_v33 }
0x115c   :  { %3947 = vmatprep.mubr.msk.f32.mxu1 %vm4273_vm5, %v4272_v47 }
0x1226   :  { %v4667_v34 = vpop.f32.mrb[18].mxu0 }
0x1227   :  { %v3924_v35 = vpop.f32.mrb[19].mxu0 }
0x122a   :  { %v4669_v36 = vpop.f32.mrb[26].mxu1  ;;  %v2308_v37 = vpop.f32.mrb[20].mxu0 }
0x122b   :  { %v2390_v38 = vmul.f32 0.35355338, %v2308_v37  ;;  %v3929_v39 = vpop.f32.mrb[27].mxu1  ;;  %v3934_v40 = vpop.f32.mrb[21].mxu0 }
0x122d   :  { %v2392_v41 = vfloor.f32 %v2390_v38 }
0x122e   :  { %v2386_v42 = vpop.f32.mrb[28].mxu1 }
0x122f   :  { %v2391_v43 = vmul.f32 0.35355338, %v2386_v42  ;;  %v3939_v44 = vpop.f32.mrb[29].mxu1  ;;  %v2394_v45 = vsel %vm204_vm6, %v2392_v41, -inf }
0x1230   :  { %2395 = vmax.xlane.f32.xlu0 %v2394_v45 }
0x1231   :  { %v2393_v46 = vfloor.f32 %v2391_v43 }
0x1233   :  { %v2397_v48 = vsel %vm204_vm6, %v2393_v46, -inf }
0x1234   :  { %2398 = vmax.xlane.f32.xlu1 %v2397_v48 }
0x1245   :  { %2492 = vrot.lane.b32.xlu1 %v4617_v1, %s4276_s14 }
0x1246   :  { %2416 = vrot.lane.b32.xlu0 %v4609_v56, %s4276_s14 }
0x1249   :  { %2570 = vrot.lane.b32.xlu1 %v4609_v56, %s4280_s18 }
0x124d   :  { %2648 = vrot.lane.b32.xlu1 %v4617_v1, %s4280_s18 }
0x1251   :  { %2646 = vrot.lane.b32.xlu1 %v4626_v0, %s4280_s18 }
0x12bd   :  { %v2396_v49 = vpop.xlane.xlu0 %2395 }
0x12be   :  { %v2400_v51 = vsub.f32 %v2392_v41, %v2396_v49 }
0x12c0   :  { %v2402_v53 = vmul.f32 1.442695, %v2400_v51 }
0x12c1   :  { %v2417_v30 = vpop.permute.xlu0 %2416  ;;  %v2399_v54 = vpop.xlane.xlu1 %2398 }
0x12c2   :  { %4201 = vpow2.f32 %v2402_v53  ;;  %v2401_v55 = vsub.f32 %v2393_v46, %v2399_v54  ;;  %3941 = vmatpush3.msra.mxu0 %v2417_v30 }
0x12c3   :  { %3950 = vmatprep.subr.mxu0 %v4272_v47 }
0x12c4   :  { %v2404_v32 = vmul.f32 1.442695, %v2401_v55 }
0x12c5   :  { %v2493_v59 = vpop.permute.xlu1 %2492 }
0x12c6   :  { %4203 = vpow2.f32 %v2404_v32  ;;  %3946 = vmatpush3.msra.mxu1 %v2493_v59 }
0x12c7   :  { %3955 = vmatprep.subr.mxu1 %v4272_v47 }
0x12c9   :  { %v2571_v6 = vpop.permute.xlu1 %2570 }
0x12cc   :  { %v4202_v62 = vpop.eup %4201 }
0x12cd   :  { %v2406_v63 = vsel %vm204_vm6, %v4202_v62, 0.0  ;;  %v2649_v11 = vpop.permute.xlu1 %2648 }
0x12ce   :  { %2407 = vadd.xlane.f32.xlu0 %v2406_v63 }
0x12d0   :  { %v4204_v2 = vpop.eup %4203 }
0x12d1   :  { %v2409_v3 = vsel %vm204_vm6, %v4204_v2, 0.0  ;;  %v2647_v15 = vpop.permute.xlu1 %2646 }
0x12d2   :  { %2410 = vadd.xlane.f32.xlu0 %v2409_v3 }
0x12e8   :  { %2568 = vrot.lane.b32.xlu0 %v4615_v60, %s4280_s18 }
0x135b   :  { %v2408_v4 = vpop.xlane.xlu0 %2407 }
0x135c   :  { %4205 = vrcp.f32 %v2408_v4 }
0x135f   :  { %v2411_v5 = vpop.xlane.xlu0 %2410 }
0x1360   :  { %4207 = vrcp.f32 %v2411_v5 }
0x1363   :  { %v2569_v14 = vpop.permute.xlu0 %2568 }
0x1366   :  { %v4206_v7 = vpop.eup %4205 }
0x1367   :  { %v2413_v9 = vmul.f32 %v4206_v7, %v4202_v62 }
0x1369   :  { %3943 = vmatmul.mubr.msk.f32.vlgmr.msra.gmra.mrb[22].mxu0 %vm204_vm6, %v2413_v9 }
0x136a   :  { %v4208_v50 = vpop.eup %4207  ;;  %3951 = vmatpush3.xpose.msk.msra.mxu0 %vm204_vm6, %v2571_v6  ;;  %3952 = vmatprep.mubr.msk.f32.mxu0 %vm4273_vm5, %v4272_v47 }
0x136b   :  { %v2415_v13 = vmul.f32 %v4208_v50, %v4204_v2  ;;  %3960 = vmatprep.subr.mxu0 %v4272_v47 }
0x136d   :  { %3948 = vmatmul.mubr.msk.f32.vlgmr.msra.gmra.mrb[30].mxu1 %vm204_vm6, %v2415_v13  ;;  %3953 = vmatmul.mubr.msk.f32.vlgmr.msra.gmra.mrb[24].mxu0 %vm204_vm6, %v2569_v14 }
0x136e   :  { %3956 = vmatpush3.xpose.msk.msra.mxu1 %vm204_vm6, %v2649_v11  ;;  %3957 = vmatprep.mubr.msk.f32.mxu1 %vm4273_vm5, %v4272_v47 }
0x136f   :  { %3965 = vmatprep.subr.mxu1 %v4272_v47  ;;  %3962 = vmatprep.mubr.msk.f32.mxu0 %vm4273_vm5, %v4272_v47 }
0x1371   :  { %3958 = vmatmul.mubr.msk.f32.vlgmr.msra.gmra.mrb[32].mxu1 %vm204_vm6, %v2647_v15 }
0x1372   :  { %3967 = vmatprep.mubr.msk.f32.mxu1 %vm4273_vm5, %v4272_v47 }
0x143c   :  { %v4705_v16 = vpop.f32.mrb[22].mxu0 }
0x143d   :  { %v3944_v17 = vpop.f32.mrb[23].mxu0 }
0x1440   :  { %v4707_v19 = vpop.f32.mrb[30].mxu1  ;;  %v2642_v10 = vpop.f32.mrb[24].mxu0 }
0x1441   :  { %v2724_v20 = vmul.f32 0.35355338, %v2642_v10  ;;  %v3949_v21 = vpop.f32.mrb[31].mxu1  ;;  %v3954_v22 = vpop.f32.mrb[25].mxu0 }
0x1443   :  { %v2726_v23 = vfloor.f32 %v2724_v20 }
0x1444   :  { %v2720_v24 = vpop.f32.mrb[32].mxu1 }
0x1445   :  { %v2725_v25 = vmul.f32 0.35355338, %v2720_v24  ;;  %v3959_v26 = vpop.f32.mrb[33].mxu1  ;;  %v2728_v27 = vsel %vm204_vm6, %v2726_v23, -inf }
0x1446   :  { %2729 = vmax.xlane.f32.xlu0 %v2728_v27 }
0x1447   :  { %v2727_v28 = vfloor.f32 %v2725_v25 }
0x1449   :  { %v2731_v52 = vsel %vm204_vm6, %v2727_v28, -inf }
0x144a   :  { %2732 = vmax.xlane.f32.xlu1 %v2731_v52 }
0x145b   :  { %2826 = vrot.lane.b32.xlu1 %v4617_v1, %s4279_s17 }
0x145c   :  { %2750 = vrot.lane.b32.xlu0 %v4609_v56, %s4279_s17  ;;  %s3594_s17 = sshll.u32 %s4289_s15, 4  ;;  %s3595_s17 = int_to_ptr.vmem [resolvable:$true] %s3594_s17 }
0x145d   :  { %s4245_s18 = scalar_lea.vmem %s3595_s17, 256  ;;  %p4250_p6 = scmp.lt.s32.totalorder %s3595_s17, %s3595_s17 }
0x145e   :  { %p4246_p5 = scmp.ne.s32.totalorder %s3595_s17, %s4245_s18  ;;  %p4251_p7 = scmp.lt.s32.totalorder %s4245_s18, %s4245_s18 }
0x145f   :  { %2904 = vrot.lane.b32.xlu1 %v4609_v56, %s4283_s21 }
0x1460   :  { %p4252_p8 = por %p4251_p7, %p4250_p6 }
0x1462   :  { %p4253_p9 = pnand %p4252_p8, %p4246_p5 }
0x1463   :  { %2982 = vrot.lane.b32.xlu1 %v4617_v1, %s4283_s21 }
0x1467   :  { %2980 = vrot.lane.b32.xlu1 %v4626_v0, %s4283_s21 }
0x14d3   :  { %v2730_v29 = vpop.xlane.xlu0 %2729 }
0x14d4   :  { %v2734_v31 = vsub.f32 %v2726_v23, %v2730_v29 }
0x14d6   :  { %v2736_v8 = vmul.f32 1.442695, %v2734_v31 }
0x14d7   :  { %v2751_v33 = vpop.permute.xlu0 %2750  ;;  %v2733_v35 = vpop.xlane.xlu1 %2732 }
0x14d8   :  { %4209 = vpow2.f32 %v2736_v8  ;;  %v2735_v37 = vsub.f32 %v2727_v28, %v2733_v35  ;;  %3961 = vmatpush3.msra.mxu0 %v2751_v33 }
0x14d9   :  { %3970 = vmatprep.subr.mxu0 %v4272_v47 }
0x14da   :  { %v2738_v38 = vmul.f32 1.442695, %v2735_v37 }
0x14db   :  { %v2827_v39 = vpop.permute.xlu1 %2826 }
0x14dc   :  { %4211 = vpow2.f32 %v2738_v38  ;;  %3966 = vmatpush3.msra.mxu1 %v2827_v39 }
0x14dd   :  { %3975 = vmatprep.subr.mxu1 %v4272_v47 }
0x14df   :  { %v2905_v45 = vpop.permute.xlu1 %2904 }
0x14e2   :  { %v4210_v40 = vpop.eup %4209 }
0x14e3   :  { %v2740_v41 = vsel %vm204_vm6, %v4210_v40, 0.0  ;;  %v2983_v51 = vpop.permute.xlu1 %2982 }
0x14e4   :  { %2741 = vadd.xlane.f32.xlu0 %v2740_v41 }
0x14e6   :  { %v4212_v0 = vpop.eup %4211 }
0x14e7   :  { %v2743_v42 = vsel %vm204_vm6, %v4212_v0, 0.0  ;;  %v2981_v30 = vpop.permute.xlu1 %2980 }
0x14e8   :  { %2744 = vadd.xlane.f32.xlu0 %v2743_v42 }
0x14fe   :  { %2902 = vrot.lane.b32.xlu0 %v4615_v60, %s4283_s21 }
0x1571   :  { %v2742_v43 = vpop.xlane.xlu0 %2741 }
0x1572   :  { %4213 = vrcp.f32 %v2742_v43 }
0x1575   :  { %v2745_v44 = vpop.xlane.xlu0 %2744 }
0x1576   :  { %4215 = vrcp.f32 %v2745_v44 }
0x1579   :  { %v2903_v60 = vpop.permute.xlu0 %2902 }
0x157c   :  { %v4214_v46 = vpop.eup %4213 }
0x157d   :  { %v2747_v48 = vmul.f32 %v4214_v46, %v4210_v40 }
0x157f   :  { %3963 = vmatmul.mubr.msk.f32.vlgmr.msra.gmra.mrb[26].mxu0 %vm204_vm6, %v2747_v48 }
0x1580   :  { %v4216_v49 = vpop.eup %4215  ;;  %3971 = vmatpush3.xpose.msk.msra.mxu0 %vm204_vm6, %v2905_v45  ;;  %3972 = vmatprep.mubr.msk.f32.mxu0 %vm4273_vm5, %v4272_v47 }
0x1581   :  { %v2749_v53 = vmul.f32 %v4216_v49, %v4212_v0  ;;  %3980 = vmatprep.subr.mxu0 %v4272_v47 }
0x1583   :  { %3968 = vmatmul.mubr.msk.f32.vlgmr.msra.gmra.mrb[34].mxu1 %vm204_vm6, %v2749_v53  ;;  %3973 = vmatmul.mubr.msk.f32.vlgmr.msra.gmra.mrb[28].mxu0 %vm204_vm6, %v2903_v60 }
0x1584   :  { %3976 = vmatpush3.xpose.msk.msra.mxu1 %vm204_vm6, %v2983_v51  ;;  %3977 = vmatprep.mubr.msk.f32.mxu1 %vm4273_vm5, %v4272_v47 }
0x1585   :  { %3985 = vmatprep.subr.mxu1 %v4272_v47  ;;  %3982 = vmatprep.mubr.msk.f32.mxu0 %vm4273_vm5, %v4272_v47 }
0x1587   :  { %3978 = vmatmul.mubr.msk.f32.vlgmr.msra.gmra.mrb[36].mxu1 %vm204_vm6, %v2981_v30 }
0x1588   :  { %3987 = vmatprep.mubr.msk.f32.mxu1 %vm4273_vm5, %v4272_v47 }
0x1652   :  { %v2822_v54 = vpop.f32.mrb[26].mxu0 }
0x1653   :  { %v3964_v55 = vpop.f32.mrb[27].mxu0 }
0x1656   :  { %v2898_v32 = vpop.f32.mrb[34].mxu1  ;;  %v2976_v59 = vpop.f32.mrb[28].mxu0 }
0x1657   :  { %v3058_v62 = vmul.f32 0.35355338, %v2976_v59  ;;  %v3969_v63 = vpop.f32.mrb[35].mxu1  ;;  %v3974_v2 = vpop.f32.mrb[29].mxu0 }
0x1659   :  { %v3060_v3 = vfloor.f32 %v3058_v62 }
0x165a   :  { %v3054_v4 = vpop.f32.mrb[36].mxu1 }
0x165b   :  { %v3059_v5 = vmul.f32 0.35355338, %v3054_v4  ;;  %v3979_v6 = vpop.f32.mrb[37].mxu1  ;;  %v3062_v7 = vsel %vm204_vm6, %v3060_v3, -inf }
0x165c   :  { %3063 = vmax.xlane.f32.xlu0 %v3062_v7  ;;  %v48_v7 = vld [vmem:[%s4860_s3] sm:$0xff] }
0x165d   :  { %v3061_v9 = vfloor.f32 %v3059_v5 }
0x165f   :  { %v3065_v50 = vsel %vm204_vm6, %v3061_v9, -inf }
0x1660   :  { %3066 = vmax.xlane.f32.xlu1 %v3065_v50  ;;  %v50_v50 = vld [vmem:[%s4860_s3 + $0x10] sm:$0xff] }
0x1671   :  { %3160 = vrot.lane.b32.xlu1 %v4617_v1, %s4282_s20 }
0x1675   :  { %4136 = vrot.lane.b32.xlu1 %v4558_v61, %s4285_s23 }
0x1679   :  { %4141 = vrot.lane.b32.xlu1 %v4580_v12, %s4285_s23 }
0x167d   :  { %3240 = vrot.lane.b32.xlu1 %v4707_v19, %s4286_s24 }
0x1681   :  { %3248 = vrot.lane.b32.xlu1 %v2898_v32, %s4287_s4 }
0x16e9   :  { %v3064_v47 = vpop.xlane.xlu0 %3063 }
0x16ea   :  { %v3068_v11 = vsub.f32 %v3060_v3, %v3064_v47 }
0x16ec   :  { %v3070_v13 = vmul.f32 1.442695, %v3068_v11  ;;  %v51_v11 = vld [vmem:[%s4860_s3 + $0x18] sm:$0xff] }
0x16ed   :  { %v3067_v14 = vpop.xlane.xlu1 %3066 }
0x16ee   :  { %4217 = vpow2.f32 %v3070_v13  ;;  %v3069_v15 = vsub.f32 %v3061_v9, %v3067_v14  ;;  %v49_v9 = vld [vmem:[%s4860_s3 + $0x8] sm:$0xff]  ;;  %v4075_v13 = vpack.c.bf16 %v51_v11, %v50_v50 }
0x16ef   :  { %v4071_v47 = vpack.c.bf16 %v49_v9, %v48_v7  ;;  %v53_v14 = vld [vmem:[%s4860_s3 + $0x28] sm:$0xff] }
0x16f0   :  { %v3072_v17 = vmul.f32 1.442695, %v3069_v15  ;;  %v54_v15 = vld [vmem:[%s4860_s3 + $0x30] sm:$0xff] }
0x16f1   :  { %v3161_v10 = vpop.permute.xlu1 %3160 }
0x16f2   :  { %4219 = vpow2.f32 %v3072_v17  ;;  %3986 = vmatpush3.msra.mxu1 %v3161_v10  ;;  %v55_v17 = vld [vmem:[%s4860_s3 + $0x38] sm:$0xff]  ;;  %v4079_v10 = vpack.c.bf16 %v54_v15, %v53_v14 }
0x16f3   :  { %4072 = vmatprep.subr.bf16.mxu1 %v4071_v47 }
0x16f5   :  { %v4137_v21 = vpop.permute.xlu1 %4136 }
0x16f6   :  { %v4139_v22 = vunpack.i.h.bf16 %v4137_v21  ;;  %v4138_v23 = vunpack.i.l.bf16 %v4137_v21 }
0x16f8   :  { %v4218_v1 = vpop.eup %4217  ;;  %v4063_v25 = vpack.c.bf16 %v4139_v22, %v4138_v23 }
0x16f9   :  { %v3074_v61 = vsel %vm204_vm6, %v4218_v1, 0.0  ;;  %v4142_v26 = vpop.permute.xlu1 %4141 }
0x16fa   :  { %3075 = vadd.xlane.f32.xlu0 %v3074_v61  ;;  %v4144_v27 = vunpack.i.h.bf16 %v4142_v26  ;;  %v4143_v28 = vunpack.i.l.bf16 %v4142_v26 }
0x16fc   :  { %v4220_v12 = vpop.eup %4219  ;;  %v4067_v29 = vpack.c.bf16 %v4144_v27, %v4143_v28 }
0x16fd   :  { %v3077_v20 = vsel %vm204_vm6, %v4220_v12, 0.0  ;;  %v3241_v40 = vpop.permute.xlu1 %3240 }
0x16fe   :  { %3078 = vadd.xlane.f32.xlu0 %v3077_v20  ;;  %v3261_v46 = vsel %vm204_vm6, %v4669_v36, %v3241_v40  ;;  %v58_v20 = vld [vmem:[%s4860_s3 + $0x50] sm:$0xff]  ;;  %v3407_v40 = vstv %s3610_s9 }
0x1701   :  { %v3249_v42 = vpop.permute.xlu1 %3248 }
0x1702   :  { %v3263_v48 = vsel %vm1563_vm8, %v3261_v46, %v3249_v42  ;;  %v59_v46 = vld [vmem:[%s4860_s3 + $0x58] sm:$0xff] }
0x1714   :  { %3084 = vrot.lane.b32.xlu0 %v4609_v56, %s4282_s20 }
0x1718   :  { %3238 = vrot.lane.b32.xlu0 %v4705_v16, %s4286_s24 }
0x171c   :  { %3246 = vrot.lane.b32.xlu0 %v2822_v54, %s4287_s4 }
0x1787   :  { %v3076_v19 = vpop.xlane.xlu0 %3075 }
0x1788   :  { %4221 = vrcp.f32 %v3076_v19 }
0x178b   :  { %v3079_v24 = vpop.xlane.xlu0 %3078 }
0x178c   :  { %4223 = vrcp.f32 %v3079_v24 }
0x178f   :  { %v3085_v52 = vpop.permute.xlu0 %3084 }
0x1790   :  { %3981 = vmatpush3.msra.mxu0 %v3085_v52 }
0x1791   :  { %4064 = vmatprep.subr.bf16.mxu0 %v4063_v25 }
0x1792   :  { %v4222_v56 = vpop.eup %4221 }
0x1793   :  { %v3081_v31 = vmul.f32 %v4222_v56, %v4218_v1  ;;  %v3239_v39 = vpop.permute.xlu0 %3238  ;;  %v56_v1 = vld [vmem:[%s4860_s3 + $0x40] sm:$0xff] }
0x1794   :  { %v3260_v0 = vsel %vm204_vm6, %v4667_v34, %v3239_v39  ;;  %v4083_v61 = vpack.c.bf16 %v56_v1, %v55_v17 }
0x1795   :  { %3983 = vmatmul.mubr.msk.f32.vlgmr.msra.gmra.mrb[30].mxu0 %vm204_vm6, %v3081_v31 }
0x1796   :  { %v4224_v16 = vpop.eup %4223  ;;  %4066 = vmatpush3.bf16.msra.mxu0 %v4063_v25 }
0x1797   :  { %v3083_v8 = vmul.f32 %v4224_v16, %v4220_v12  ;;  %4068 = vmatprep.subr.bf16.mxu0 %v4067_v29  ;;  %v3247_v41 = vpop.permute.xlu0 %3246  ;;  %v57_v12 = vld [vmem:[%s4860_s3 + $0x48] sm:$0xff] }
0x1798   :  { %v3262_v43 = vsel %vm1563_vm8, %v3260_v0, %v3247_v41  ;;  %v4087_v19 = vpack.c.bf16 %v58_v20, %v57_v12 }
0x1799   :  { %3988 = vmatmul.mubr.msk.f32.vlgmr.msra.gmra.mrb[38].mxu1 %vm204_vm6, %v3083_v8 }
0x179a   :  { %4070 = vmatpush3.bf16.msra.mxu0 %v4067_v29  ;;  %4074 = vmatpush3.bf16.msra.mxu1 %v4071_v47 }
0x179b   :  { %4076 = vmatprep.subr.bf16.mxu1 %v4075_v13  ;;  %4080 = vmatprep.subr.bf16.mxu0 %v4079_v10 }
0x179e   :  { %4078 = vmatpush3.bf16.msra.mxu1 %v4075_v13 }
0x1868   :  { %v3156_v33 = vpop.f32.mrb[30].mxu0 }
0x1869   :  { %3254 = vrot.lane.b32.xlu0 %v3156_v33, %s4288_s25  ;;  %v3984_v35 = vpop.f32.mrb[31].mxu0 }
0x186c   :  { %v3232_v37 = vpop.f32.mrb[38].mxu1 }
0x186d   :  { %3256 = vrot.lane.b32.xlu1 %v3232_v37, %s4288_s25  ;;  %v3989_v38 = vpop.f32.mrb[39].mxu1  ;;  %3278 = vrot.lane.b32.xlu0 %v4592_v18, %s4285_s23  ;;  %v3398_v37 = vstv %s3609_s8 }
0x18db   :  { %v3255_v44 = vpop.permute.xlu0 %3254 }
0x18dc   :  { %v3264_v45 = vsel %vm1566_vm7, %v3262_v43, %v3255_v44 }
0x18dd   :  { %3998 = vmatprep.mubr.msk.f32.mxu0 %vm68_vm0, %v3264_v45 }
0x18df   :  { %v3257_v18 = vpop.permute.xlu1 %3256  ;;  %v3279_v51 = vpop.permute.xlu0 %3278 }
0x18e0   :  { %v3265_v49 = vsel %vm1566_vm7, %v3263_v48, %v3257_v18  ;;  %v60_v48 = vld [vmem:[%s4860_s3 + $0x60] sm:$0xff] }
0x18e1   :  { %3999 = vmatmul.mubr.msk.f32.vlgmr.msra.gmra.mrb[32].mxu0 %vm68_vm0, %v3265_v49  ;;  %v4091_v18 = vpack.c.bf16 %v60_v48, %v59_v46  ;;  %v3410_v49 = vlaneseq }
0x18e2   :  { %4082 = vmatpush3.bf16.msra.mxu0 %v4079_v10 }
0x18e3   :  { %4084 = vmatprep.subr.bf16.mxu0 %v4083_v61 }
0x18e6   :  { %4086 = vmatpush3.bf16.msra.mxu0 %v4083_v61 }
0x18e7   :  { %4088 = vmatprep.subr.bf16.mxu0 %v4087_v19 }
0x18ea   :  { %4090 = vmatpush3.bf16.msra.mxu0 %v4087_v19 }
0x18eb   :  { %4092 = vmatprep.subr.bf16.mxu0 %v4091_v18 }
0x18ee   :  { %4094 = vmatpush3.bf16.msra.mxu0 %v4091_v18 }
0x19b4   :  { %v4000_v34 = vpop.f32.mrb[32].mxu0 }
0x19b5   :  { %v3359_v53 = vadd.f32 %v4000_v34, %v3279_v51  ;;  %v3353_v60 = vpop.f32.mrb[33].mxu0 }
0x19b6   :  { %v3354_v30 = vadd.f32 %v3353_v60, %v3279_v51  ;;  %v3411_v51 = vshrl.u32 %v3410_v49, 7 }
0x19b7   :  { %v4778_v54 = vadd.f32 %v3359_v53, %v4543_v57  ;;  %v52_v53 = vld [vmem:[%s4860_s3 + $0x20] sm:$0xff] }
0x19b8   :  { %v4781_v55 = vadd.f32 %v3354_v30, %v4546_v58  ;;  %v3412_v34 = vsub.s32 0, %v3411_v51 }
0x19b9   :  { %v3367_v36 = vsel %vm68_vm0, %v4778_v54, 0.0 }
0x19ba   :  { %3368 = vadd.xlane.f32.xlu0 %v3367_v36  ;;  %v3364_v32 = vsel %vm68_vm0, %v4781_v55, 0.0  ;;  %v3413_v60 = vrot.slane %v52_v53, %v3412_v34 }
0x19bb   :  { %3365 = vadd.xlane.f32.xlu1 %v3364_v32 }
0x1a47   :  { %v3369_v59 = vpop.xlane.xlu0 %3368 }
0x1a48   :  { %v3371_v62 = vmul.f32 0.03125, %v3369_v59  ;;  %v3366_v63 = vpop.xlane.xlu1 %3365 }
0x1a49   :  { %v3370_v2 = vmul.f32 0.03125, %v3366_v63 }
0x1a4a   :  { %v4788_v3 = vsub.f32 %v4778_v54, %v3371_v62 }
0x1a4b   :  { %v3372_v57 = vsub.f32 %v4781_v55, %v3370_v2  ;;  %v3675_v2 = vld [vmem:[%s4860_s3 + $0x68] ss:$0 sm:$0xff] }
0x1a4c   :  { %v3375_v5 = vmul.f32 %v4788_v3, %v4788_v3  ;;  %v3400_v0 = vmul.f32 %v3398_v37, %v4788_v3 }
0x1a4d   :  { %v3374_v4 = vmul.f32 %v3372_v57, %v3372_v57  ;;  %v3399_v38 = vmul.f32 %v3398_v37, %v3372_v57 }
0x1a4e   :  { %v3379_v6 = vsel %vm68_vm0, %v3375_v5, 0.0 }
0x1a4f   :  { %v3376_v58 = vsel %vm68_vm0, %v3374_v4, 0.0 }
0x1a50   :  { %3377 = vadd.xlane.f32.xlu0 %v3376_v58 }
0x1a54   :  { %3380 = vadd.xlane.f32.xlu0 %v3379_v6 }
0x1add   :  { %v3378_v21 = vpop.xlane.xlu0 %3377 }
0x1ade   :  { %v3382_v22 = vmul.f32 0.032258064, %v3378_v21 }
0x1ae0   :  { %4225 = vrsqrt.f32 %v3382_v22  ;;  %vm3386_vm13 = vcmp.eq.f32.partialorder %v3382_v22, inf  ;;  %v3389_v27 = vand.u32 2147483648, %v3382_v22  ;;  %vm3388_vm14 = vcmp.eq.f32.partialorder %v3382_v22, 0.0 }
0x1ae1   :  { %v3381_v23 = vpop.xlane.xlu0 %3380 }
0x1ae2   :  { %v3383_v24 = vmul.f32 0.032258064, %v3381_v23 }
0x1ae4   :  { %4227 = vrsqrt.f32 %v3383_v24  ;;  %vm3393_vm15 = vcmp.eq.f32.partialorder %v3383_v24, inf  ;;  %v3396_v16 = vand.u32 2147483648, %v3383_v24  ;;  %vm3395_vm1 = vcmp.eq.f32.partialorder %v3383_v24, 0.0 }
0x1aea   :  { %v4226_v25 = vpop.eup %4225 }
0x1aeb   :  { %v3385_v26 = vmul.f32 %v4226_v25, %v3382_v22 }
0x1aed   :  { %v3387_v28 = vsel %vm3386_vm13, %v3382_v22, %v3385_v26 }
0x1aee   :  { %v4228_v52 = vpop.eup %4227  ;;  %v3390_v56 = vsel %vm3388_vm14, %v3389_v27, %v3387_v28 }
0x1aef   :  { %v3392_v29 = vmul.f32 %v4228_v52, %v3383_v24  ;;  %v3401_v31 = vadd.f32 1e-06, %v3390_v56 }
0x1af1   :  { %v3394_v8 = vsel %vm3393_vm15, %v3383_v24, %v3392_v29  ;;  %4229 = vrcp.f32 %v3401_v31 }
0x1af2   :  { %v3397_v33 = vsel %vm3395_vm1, %v3396_v16, %v3394_v8 }
0x1af3   :  { %v3402_v35 = vadd.f32 1e-06, %v3397_v33 }
0x1af5   :  { %4231 = vrcp.f32 %v3402_v35 }
0x1afb   :  { %v4230_v39 = vpop.eup %4229 }
0x1afc   :  { %v3404_v41 = vmul.f32 %v4230_v39, %v3399_v38 }
0x1afe   :  { %v3408_v42 = vadd.f32 %v3407_v40, %v3404_v41 }
0x1aff   :  { %v4232_v43 = vpop.eup %4231 }
0x1b00   :  { %v3406_v44 = vmul.f32 %v4232_v43, %v3400_v0  ;;  %4009 = vmatprep.mubr.msk.f32.mxu1 %vm68_vm0, %v3408_v42 }
0x1b02   :  { %v3409_v45 = vadd.f32 %v3407_v40, %v3406_v44 }
0x1b04   :  { %4010 = vmatmul.mubr.msk.f32.vlgmr.msra.gmra.mrb[40].mxu1 %vm68_vm0, %v3409_v45 }
0x1bd7   :  { %v4011_v30 = vpop.f32.mrb[40].mxu1 }
0x1bd8   :  { %v3492_v36 = vadd.f32 %v4011_v30, %v3413_v60  ;;  %v3486_v32 = vpop.f32.mrb[41].mxu1 }
0x1bd9   :  { %v3487_v59 = vadd.f32 %v3486_v32, %v3413_v60 }
0x1bda   :  { %v3496_v63 = vmax.f32 %v3492_v36, 0.0 }
0x1bdb   :  { %v3495_v62 = vmax.f32 %v3487_v59, 0.0 }
0x1bdd   :  { %4028 = vmatprep.mubr.msk.f32.mxu0 %vm3497_vm2, %v3495_v62 }
0x1bde   :  { %4029 = vmatmul.mubr.msk.f32.vlgmr.msra.gmra.mrb[34].mxu0 %vm3497_vm2, %v3496_v63 }
0x1cb1   :  { %v4030_v3 = vpop.f32.mrb[34].mxu0 }
0x1cb2   :  { %v3580_v57 = vadd.f32 %v4030_v3, %v4778_v54  ;;  %v3570_v4 = vpop.f32.mrb[35].mxu0 }
0x1cb3   :  { %v3579_v58 = vadd.f32 %v3570_v4, %v4781_v55 }
0x1cb4   :  { %v3586_v5 = vadd.f32 %v3675_v2, %v3580_v57 }
0x1cb5   :  { %v3585_v6 = vadd.f32 %v3675_v2, %v3579_v58 }
0x1cb6   :  { %3588 = vst.msk [vmem:[#allocation5 + $0x8] sm:$0xff] %vm68_vm0, %v3586_v5 }
0x1cb7   :  { %3587 = vst.msk [vmem:[#allocation5] sm:$0xff] %vm68_vm0, %v3585_v6 }
0x1cb8   :  { %4256 = shalt.err (!%p4253_p9)
}
0x1cb9   :  { %s4257_s20 = scalar_lea.hbm %s4862_s5, 256 }
0x1cba   :  { %p4258_p10 = scmp.ne.s32.totalorder %s4862_s5, %s4257_s20  ;;  %p4261_p11 = scmp.lt.u32.totalorder %s4257_s20, %s4862_s5 }
0x1cbc   :  { %p4263_p12 = pnand %p4261_p11, %p4258_p10 }
0x1cbe   :  { %4266 = shalt.err (!%p4263_p12)
}
0x1cbf   :  { %s4290_s25 = smov 128  }
0x1cc0   :  { %3600 = dma.vmem_to_hbm [thread:$0]  %s3595_s17, 256, %s4862_s5, [#allocation3], %s4290_s25, %s4290_s25, %s4286_s24  }
0x1cc1   :  { %4269 = dma.done.wait [#allocation3], 256  }
0x1cc2   :  { %4270 = vsyncadd [#allocation3], 4294967040 }
0x1cc3   :  { %3604 = vsyncpa [#allocation3], 1 }
0x1cc4   :  { %3605 = vsyncpa [#allocation4], 1 }

</bundles_post_ra>
